<compile_context>
chip_gen: v7x
topology: tpu7x:2x2x1
jax: 0.10.0
libtpu: 0.0.40
codegen_flags: <defaults>
</compile_context>

<pallas_src>
import functools

import jax
import jax.numpy as jnp
from jax.experimental import pallas as pl
from jax.experimental.pallas import tpu as pltpu

LANES = 128


def _round_up(x, m):
    return ((x + m - 1) // m) * m


def _pick_tile(n, candidates):
    for c in candidates:
        if c <= n and n % c == 0:
            return c
    return n


def _pad_rows(a, n_rows):
    pad = n_rows - a.shape[0]
    if pad > 0:
        a = jnp.pad(a, ((0, pad),) + ((0, 0),) * (a.ndim - 1))
    return a


# ---------------------------------------------------------------------------
# Kernel 1: one signed-aggregation layer, tiled over (row-tile i, K-tile k).
#   grid step (i, k): accumulate A_pos[i,k] @ hp[k] and A_neg[i,k] @ hn[k]
#   (int8 adjacency upcast to bf16 in-kernel, f32 accumulators). At the last k:
#   out[i] = act( hs[i] + inv_deg_pos[i]*acc_pos + inv_deg_neg[i]*acc_neg )
# ---------------------------------------------------------------------------
def shig_layer_kernel(adj_ref, hp_ref, hn_ref, hs_ref, invd_ref, out_ref,
                      acc_pos_ref, acc_neg_ref, *, apply_relu):
    k = pl.program_id(1)

    @pl.when(k == 0)
    def _init():
        acc_pos_ref[...] = jnp.zeros_like(acc_pos_ref)
        acc_neg_ref[...] = jnp.zeros_like(acc_neg_ref)

    # Binary adjacency: int8 -> bf16 is exact; cast rides VPU slack.
    a_pos = adj_ref[0].astype(jnp.bfloat16)                        # (tm, tk)
    a_neg = adj_ref[1].astype(jnp.bfloat16)
    acc_pos_ref[...] += jnp.dot(a_pos, hp_ref[...],
                                preferred_element_type=jnp.float32)
    acc_neg_ref[...] += jnp.dot(a_neg, hn_ref[...],
                                preferred_element_type=jnp.float32)

    @pl.when(k == pl.num_programs(1) - 1)
    def _finalize():
        inv_pos = invd_ref[:, 0:1]                                 # (tm, 1) f32
        inv_neg = invd_ref[:, 1:2]
        out = hs_ref[...] + inv_pos * acc_pos_ref[...] + inv_neg * acc_neg_ref[...]
        if apply_relu:
            out = jnp.maximum(out, 0.0)
        out_ref[...] = out                                         # lane-dense (tm, 128)


def shig_layer(hp_bf16, hn_bf16, hs_f32, adj_stack_i8, inv_deg, *,
               apply_relu, tm, tk):
    n_pad, d_pad = hs_f32.shape
    grid = (n_pad // tm, n_pad // tk)
    kernel = functools.partial(shig_layer_kernel, apply_relu=apply_relu)
    return pl.pallas_call(
        kernel,
        out_shape=jax.ShapeDtypeStruct((n_pad, d_pad), jnp.float32),
        grid_spec=pltpu.PrefetchScalarGridSpec(
            num_scalar_prefetch=0,
            grid=grid,
            in_specs=[
                pl.BlockSpec((2, tm, tk), lambda i, k: (0, i, k)),   # [A_pos;A_neg] int8
                pl.BlockSpec((tk, d_pad), lambda i, k: (k, 0)),      # hp (bf16)
                pl.BlockSpec((tk, d_pad), lambda i, k: (k, 0)),      # hn (bf16)
                pl.BlockSpec((tm, d_pad), lambda i, k: (i, 0)),      # hs (f32 self+bias)
                pl.BlockSpec((tm, 2), lambda i, k: (i, 0)),          # [1/deg_pos, 1/deg_neg]
            ],
            out_specs=pl.BlockSpec((tm, d_pad), lambda i, k: (i, 0)),
            scratch_shapes=[pltpu.VMEM((tm, d_pad), jnp.float32),
                            pltpu.VMEM((tm, d_pad), jnp.float32)],
        ),
        compiler_params=pltpu.CompilerParams(
            dimension_semantics=("parallel", "arbitrary"),
            vmem_limit_bytes=48 * 1024 * 1024),
    )(adj_stack_i8, hp_bf16, hn_bf16, hs_f32, inv_deg)


# ---------------------------------------------------------------------------
# Kernel 2: signed link-prediction loss, tiled over edges.
#   loss = sum_e weight_e * softplus(<src_signed_e, dst_e>)
#   The edge sign is pre-folded into src (src rows of positive edges negated),
#   and 1/E plus the padding mask are folded into weight.
# ---------------------------------------------------------------------------
def sign_loss_kernel(src_ref, dst_ref, wgt_ref, loss_ref):
    e = pl.program_id(0)

    @pl.when(e == 0)
    def _init():
        loss_ref[...] = jnp.zeros_like(loss_ref)

    x = jnp.sum(src_ref[...] * dst_ref[...], axis=-1, keepdims=True)   # (te, 1)
    softplus = jnp.maximum(x, 0.0) + jnp.log1p(jnp.exp(-jnp.abs(x)))
    loss_ref[...] += jnp.sum(wgt_ref[...] * softplus, axis=0, keepdims=True)


def sign_loss(src_emb, dst_emb, weight, *, te):
    e_pad, d = src_emb.shape
    out = pl.pallas_call(
        sign_loss_kernel,
        out_shape=jax.ShapeDtypeStruct((1, 1), jnp.float32),
        grid_spec=pltpu.PrefetchScalarGridSpec(
            num_scalar_prefetch=0,
            grid=(e_pad // te,),
            in_specs=[
                pl.BlockSpec((te, d), lambda e: (e, 0)),
                pl.BlockSpec((te, d), lambda e: (e, 0)),
                pl.BlockSpec((te, 1), lambda e: (e, 0)),
            ],
            out_specs=pl.BlockSpec((1, 1), lambda e: (0, 0)),
        ),
        compiler_params=pltpu.CompilerParams(
            dimension_semantics=("arbitrary",)),
    )(src_emb, dst_emb, weight)
    return out[0, 0]


# ---------------------------------------------------------------------------
# Glue: adjacency construction, params, network wrapper
# ---------------------------------------------------------------------------
def build_binary_adj(edges, n):
    """Dense binary symmetric adjacency (int8) + exact f32 inverse degree."""
    src, dst = edges[0], edges[1]
    adj = jnp.zeros((n, n), jnp.float32)
    adj = adj.at[src, dst].max(1.0)   # scatter-max: no double-count of dups/self-loops
    adj = adj.at[dst, src].max(1.0)
    deg = adj.sum(axis=1, keepdims=True)
    inv_deg = jnp.where(deg > 0.0, 1.0 / jnp.maximum(deg, 1.0), 0.0)
    return adj.astype(jnp.int8), inv_deg
    # TODO(synk): replace dense N x N adjacency with a sparse CSR segment-sum
    #             aggregation kernel for large graphs (dense path is O(N^2)).


class SHIGNetworkPallas:
    """JAX/Pallas re-implementation of SHIGNetwork's forward pass."""

    def __init__(self, seed, in_dim, out_dim, num_layers, hidden_dim):
        dims = [in_dim] + [hidden_dim] * (num_layers - 1) + [out_dim]
        key = jax.random.PRNGKey(seed)
        self.params = []
        for l in range(num_layers):
            d_in, d_out = dims[l], dims[l + 1]
            d_in_p, d_out_p = _round_up(d_in, LANES), _round_up(d_out, LANES)
            key, k1, k2, k3 = jax.random.split(key, 4)
            scale = 1.0 / jnp.sqrt(jnp.float32(d_in))

            def pad_w(w):
                return jnp.zeros((d_in_p, d_out_p), jnp.float32).at[:d_in, :d_out].set(w)

            self.params.append(dict(
                w_self=pad_w(jax.random.normal(k1, (d_in, d_out), jnp.float32) * scale),
                w_pos=pad_w(jax.random.normal(k2, (d_in, d_out), jnp.float32) * scale),
                w_neg=pad_w(jax.random.normal(k3, (d_in, d_out), jnp.float32) * scale),
                b=jnp.zeros((1, d_out_p), jnp.float32),
            ))
        self.num_layers = num_layers
        self.in_dim = in_dim
        self.out_dim = out_dim

    def forward(self, X, positive_edges, negative_edges, target=None):
        # `target` accepted for API parity with the PyTorch module; unused by the loss.
        n, d_in = X.shape

        pos_adj, pos_inv = build_binary_adj(positive_edges, n)
        neg_adj, neg_inv = build_binary_adj(negative_edges, n)

        # Node/tile padding (rows multiple of 128); adjacency at 1 B/elem.
        n_pad = _round_up(max(n, LANES), LANES)
        tm = n_pad if n_pad <= 512 else _pick_tile(n_pad, (512, 256, 128))
        tk = n_pad if n_pad <= 2048 else _pick_tile(n_pad, (2048, 1024, 512, 256, 128))
        # TODO(synk): for graphs whose full int8 adjacency fits VMEM, keep it
        #             resident across layers inside one pallas_call instead of
        #             re-streaming it once per layer.

        adj_stack = jnp.zeros((2, n_pad, n_pad), jnp.int8)
        adj_stack = adj_stack.at[0, :n, :n].set(pos_adj)
        adj_stack = adj_stack.at[1, :n, :n].set(neg_adj)

        inv_deg = jnp.zeros((n_pad, 2), jnp.float32)
        inv_deg = inv_deg.at[:n, 0:1].set(pos_inv)
        inv_deg = inv_deg.at[:n, 1:2].set(neg_inv)

        d_in_p = _round_up(d_in, LANES)
        h = jnp.zeros((n_pad, d_in_p), jnp.float32).at[:n, :d_in].set(
            X.astype(jnp.float32))

        # Hoisted transform: tiny (n_pad,128)x(128,128) matmuls per layer; the
        # Pallas kernel only streams the (int8) adjacency against hp/hn.
        for l, p in enumerate(self.params):
            hs = jnp.dot(h, p["w_self"]) + p["b"]                 # f32 self + bias
            hp = jnp.dot(h, p["w_pos"]).astype(jnp.bfloat16)
            hn = jnp.dot(h, p["w_neg"]).astype(jnp.bfloat16)
            h = shig_layer(hp, hn, hs, adj_stack, inv_deg,
                           apply_relu=(l < self.num_layers - 1),
                           tm=tm, tk=tk)                          # (n_pad, 128) f32
        z_pad = h                                                  # padded cols are 0
        z = z_pad[:n, :self.out_dim]

        # Edge-endpoint gather (XLA gather, lane-dense 128 cols) + tiled loss kernel.
        # TODO(synk): fuse this gather into the loss kernel via scalar-prefetched
        #             row indices (pl.Element / manual DMA gather) to avoid the
        #             intermediate [E, 128] HBM round-trip for large edge counts.
        ep = int(positive_edges.shape[1])
        en = int(negative_edges.shape[1])
        src_idx = jnp.concatenate([positive_edges[0], negative_edges[0]])
        dst_idx = jnp.concatenate([positive_edges[1], negative_edges[1]])
        src_emb = jnp.take(z_pad, src_idx, axis=0)                 # (E, 128) f32
        dst_emb = jnp.take(z_pad, dst_idx, axis=0)

        # Fold the edge sign into src (positive edges use -<z_i,z_j>).
        sign = jnp.concatenate([-jnp.ones((ep, 1), jnp.float32),
                                jnp.ones((en, 1), jnp.float32)])
        src_emb = src_emb * sign
        # Fold 1/E (and padding mask) into a per-edge weight.
        weight = jnp.concatenate(
            [jnp.full((ep, 1), 1.0 / max(ep, 1), jnp.float32),
             jnp.full((en, 1), 1.0 / max(en, 1), jnp.float32)])

        e_tot = ep + en
        e_pad = _round_up(max(e_tot, 8), LANES)
        te = min(2048, e_pad)
        e_pad = _round_up(e_pad, te)
        src_emb = _pad_rows(src_emb, e_pad)
        dst_emb = _pad_rows(dst_emb, e_pad)
        weight = _pad_rows(weight, e_pad)   # padded edges get weight 0 -> no effect

        loss = sign_loss(src_emb, dst_emb, weight, te=te)
        return loss, z


if __name__ == "__main__":
    key = jax.random.PRNGKey(0)

    # Small synthetic problem: 300 nodes (padded to 384 -> single (tm,tk) tile),
    # 16 input features, 2 layers -> 32-dim embeddings (padded to 128 lanes).
    N, F, HIDDEN, OUT, NUM_LAYERS = 300, 16, 32, 32, 2
    EP, EN = 300, 260   # enough edges to exercise the tiled loss path

    k_x, k_pe, k_ne = jax.random.split(key, 3)
    X = jax.random.normal(k_x, (N, F), jnp.float32)
    positive_edges = jax.random.randint(k_pe, (2, EP), 0, N, dtype=jnp.int32)
    negative_edges = jax.random.randint(k_ne, (2, EN), 0, N, dtype=jnp.int32)
    target = jnp.concatenate([jnp.ones((EP,), jnp.int32),
                              jnp.zeros((EN,), jnp.int32)])  # unused (parity only)

    net = SHIGNetworkPallas(seed=42, in_dim=F, out_dim=OUT,
                            num_layers=NUM_LAYERS, hidden_dim=HIDDEN)

    loss, z = net.forward(X, positive_edges, negative_edges, target)
    jax.block_until_ready((loss, z))

    assert z.shape == (N, OUT)
    assert bool(jnp.isfinite(loss))
    print("KERNEL_OK")
</pallas_src>

<mosaic_0001>
module attributes {stable_mosaic.version = 11 : i64} {
  func.func @shig_layer_kernel(%arg0: i32, %arg1: i32, %arg2: memref<2x384x384xi8, #tpu.memory_space<vmem>>, %arg3: memref<384x128xbf16, #tpu.memory_space<vmem>>, %arg4: memref<384x128xbf16, #tpu.memory_space<vmem>>, %arg5: memref<384x128xf32, #tpu.memory_space<vmem>>, %arg6: memref<384x2xf32, #tpu.memory_space<vmem>>, %arg7: memref<384x128xf32, #tpu.memory_space<vmem>>, %arg8: memref<384x128xf32, #tpu.memory_space<vmem>>, %arg9: memref<384x128xf32, #tpu.memory_space<vmem>>) attributes {dimension_semantics = [#tpu.dimension_semantics<parallel>, #tpu.dimension_semantics<arbitrary>], iteration_bounds = array<i64: 1, 1>, scalar_prefetch = 0 : i64, scratch_operands = 2 : i64, tpu.core_type = #tpu.core_type<tc>, window_params = [{transform_indices = @transform_0, window_bounds = array<i64: 2, 384, 384>}, {transform_indices = @transform_1, window_bounds = array<i64: 384, 128>}, {transform_indices = @transform_2, window_bounds = array<i64: 384, 128>}, {transform_indices = @transform_3, window_bounds = array<i64: 384, 128>}, {transform_indices = @transform_4, window_bounds = array<i64: 384, 2>}, {transform_indices = @transform_5, window_bounds = array<i64: 384, 128>}]} {
    %c0_i32 = arith.constant 0 : i32
    %0 = arith.cmpi eq, %arg1, %c0_i32 : i32
    %1 = arith.extui %0 : i1 to i32
    %c0_i32_0 = arith.constant 0 : i32
    %2 = arith.cmpi ne, %1, %c0_i32_0 : i32
    scf.if %2 {
      %cst_20 = arith.constant 0.000000e+00 : f32
      %22 = vector.broadcast %cst_20 : f32 to vector<384x128xf32>
      %c0_21 = arith.constant 0 : index
      %c0_22 = arith.constant 0 : index
      %23 = vector.load %arg8[%c0_21, %c0_22] : memref<384x128xf32, #tpu.memory_space<vmem>>, vector<384x128xf32>
      tpu.vector_store %arg8[%c0_21, %c0_22], %22 {strides = array<i32>} : memref<384x128xf32, #tpu.memory_space<vmem>>, vector<384x128xf32>,
      %cst_23 = arith.constant 0.000000e+00 : f32
      %24 = vector.broadcast %cst_23 : f32 to vector<384x128xf32>
      %c0_24 = arith.constant 0 : index
      %c0_25 = arith.constant 0 : index
      %25 = vector.load %arg9[%c0_24, %c0_25] : memref<384x128xf32, #tpu.memory_space<vmem>>, vector<384x128xf32>
      tpu.vector_store %arg9[%c0_24, %c0_25], %24 {strides = array<i32>} : memref<384x128xf32, #tpu.memory_space<vmem>>, vector<384x128xf32>,
    } else {
    }
    %c0 = arith.constant 0 : index
    %c0_1 = arith.constant 0 : index
    %c0_2 = arith.constant 0 : index
    %3 = vector.load %arg2[%c0, %c0_1, %c0_2] : memref<2x384x384xi8, #tpu.memory_space<vmem>>, vector<1x384x384xi8>
    %4 = vector.shape_cast %3 : vector<1x384x384xi8> to vector<384x384xi8>
    %5 = arith.sitofp %4 : vector<384x384xi8> to vector<384x384xbf16>
    %c1 = arith.constant 1 : index
    %c0_3 = arith.constant 0 : index
    %c0_4 = arith.constant 0 : index
    %6 = vector.load %arg2[%c1, %c0_3, %c0_4] : memref<2x384x384xi8, #tpu.memory_space<vmem>>, vector<1x384x384xi8>
    %7 = vector.shape_cast %6 : vector<1x384x384xi8> to vector<384x384xi8>
    %8 = arith.sitofp %7 : vector<384x384xi8> to vector<384x384xbf16>
    %c0_5 = arith.constant 0 : index
    %c0_6 = arith.constant 0 : index
    %9 = vector.load %arg8[%c0_5, %c0_6] : memref<384x128xf32, #tpu.memory_space<vmem>>, vector<384x128xf32>
    %c0_7 = arith.constant 0 : index
    %c0_8 = arith.constant 0 : index
    %10 = vector.load %arg3[%c0_7, %c0_8] : memref<384x128xbf16, #tpu.memory_space<vmem>>, vector<384x128xbf16>
    %cst = arith.constant dense<0.000000e+00> : vector<384x128xf32>
    %11 = tpu.matmul %5, %10, %cst {dimension_numbers = #tpu.dot_dimension_numbers<[1], [0], [0], [1], [0, 0, 1, 1], [], []>} : vector<384x384xbf16>, vector<384x128xbf16>, vector<384x128xf32> -> vector<384x128xf32>
    %12 = arith.addf %9, %11 : vector<384x128xf32>
    %c0_9 = arith.constant 0 : index
    %c0_10 = arith.constant 0 : index
    %13 = vector.load %arg8[%c0_9, %c0_10] : memref<384x128xf32, #tpu.memory_space<vmem>>, vector<384x128xf32>
    tpu.vector_store %arg8[%c0_9, %c0_10], %12 {strides = array<i32>} : memref<384x128xf32, #tpu.memory_space<vmem>>, vector<384x128xf32>,
    %c0_11 = arith.constant 0 : index
    %c0_12 = arith.constant 0 : index
    %14 = vector.load %arg9[%c0_11, %c0_12] : memref<384x128xf32, #tpu.memory_space<vmem>>, vector<384x128xf32>
    %c0_13 = arith.constant 0 : index
    %c0_14 = arith.constant 0 : index
    %15 = vector.load %arg4[%c0_13, %c0_14] : memref<384x128xbf16, #tpu.memory_space<vmem>>, vector<384x128xbf16>
    %cst_15 = arith.constant dense<0.000000e+00> : vector<384x128xf32>
    %16 = tpu.matmul %8, %15, %cst_15 {dimension_numbers = #tpu.dot_dimension_numbers<[1], [0], [0], [1], [0, 0, 1, 1], [], []>} : vector<384x384xbf16>, vector<384x128xbf16>, vector<384x128xf32> -> vector<384x128xf32>
    %17 = arith.addf %14, %16 : vector<384x128xf32>
    %c0_16 = arith.constant 0 : index
    %c0_17 = arith.constant 0 : index
    %18 = vector.load %arg9[%c0_16, %c0_17] : memref<384x128xf32, #tpu.memory_space<vmem>>, vector<384x128xf32>
    tpu.vector_store %arg9[%c0_16, %c0_17], %17 {strides = array<i32>} : memref<384x128xf32, #tpu.memory_space<vmem>>, vector<384x128xf32>,
    %c0_i32_18 = arith.constant 0 : i32
    %19 = arith.cmpi eq, %arg1, %c0_i32_18 : i32
    %20 = arith.extui %19 : i1 to i32
    %c0_i32_19 = arith.constant 0 : i32
    %21 = arith.cmpi ne, %20, %c0_i32_19 : i32
    scf.if %21 {
      %c0_20 = arith.constant 0 : index
      %c0_21 = arith.constant 0 : index
      %22 = vector.load %arg6[%c0_20, %c0_21] : memref<384x2xf32, #tpu.memory_space<vmem>>, vector<384x1xf32>
      %c0_22 = arith.constant 0 : index
      %c1_23 = arith.constant 1 : index
      %23 = vector.load %arg6[%c0_22, %c1_23] : memref<384x2xf32, #tpu.memory_space<vmem>>, vector<384x1xf32>
      %c0_24 = arith.constant 0 : index
      %c0_25 = arith.constant 0 : index
      %24 = vector.load %arg5[%c0_24, %c0_25] : memref<384x128xf32, #tpu.memory_space<vmem>>, vector<384x128xf32>
      %c0_26 = arith.constant 0 : index
      %c0_27 = arith.constant 0 : index
      %25 = vector.load %arg8[%c0_26, %c0_27] : memref<384x128xf32, #tpu.memory_space<vmem>>, vector<384x128xf32>
      %26 = vector.broadcast %22 : vector<384x1xf32> to vector<384x128xf32>
      %27 = arith.mulf %26, %25 : vector<384x128xf32>
      %28 = arith.addf %24, %27 : vector<384x128xf32>
      %c0_28 = arith.constant 0 : index
      %c0_29 = arith.constant 0 : index
      %29 = vector.load %arg9[%c0_28, %c0_29] : memref<384x128xf32, #tpu.memory_space<vmem>>, vector<384x128xf32>
      %30 = vector.broadcast %23 : vector<384x1xf32> to vector<384x128xf32>
      %31 = arith.mulf %30, %29 : vector<384x128xf32>
      %32 = arith.addf %28, %31 : vector<384x128xf32>
      %cst_30 = arith.constant 0.000000e+00 : f32
      %33 = vector.broadcast %cst_30 : f32 to vector<384x128xf32>
      %34 = arith.maximumf %32, %33 : vector<384x128xf32>
      %c0_31 = arith.constant 0 : index
      %c0_32 = arith.constant 0 : index
      %35 = vector.load %arg7[%c0_31, %c0_32] : memref<384x128xf32, #tpu.memory_space<vmem>>, vector<384x128xf32>
      tpu.vector_store %arg7[%c0_31, %c0_32], %34 {strides = array<i32>} : memref<384x128xf32, #tpu.memory_space<vmem>>, vector<384x128xf32>,
    } else {
    }
    return
  }
  func.func @transform_0(%arg0: i32, %arg1: i32) -> (i32, i32, i32) {
    %c0_i32 = arith.constant 0 : i32
    %c0_i32_0 = arith.constant 0 : i32
    return %c0_i32, %arg0, %arg1 : i32, i32, i32
  }
  func.func @transform_1(%arg0: i32, %arg1: i32) -> (i32, i32) {
    %c0_i32 = arith.constant 0 : i32
    %c0_i32_0 = arith.constant 0 : i32
    return %arg1, %c0_i32 : i32, i32
  }
  func.func @transform_2(%arg0: i32, %arg1: i32) -> (i32, i32) {
    %c0_i32 = arith.constant 0 : i32
    %c0_i32_0 = arith.constant 0 : i32
    return %arg1, %c0_i32 : i32, i32
  }
  func.func @transform_3(%arg0: i32, %arg1: i32) -> (i32, i32) {
    %c0_i32 = arith.constant 0 : i32
    %c0_i32_0 = arith.constant 0 : i32
    return %arg0, %c0_i32 : i32, i32
  }
  func.func @transform_4(%arg0: i32, %arg1: i32) -> (i32, i32) {
    %c0_i32 = arith.constant 0 : i32
    %c0_i32_0 = arith.constant 0 : i32
    return %arg0, %c0_i32 : i32, i32
  }
  func.func @transform_5(%arg0: i32, %arg1: i32) -> (i32, i32) {
    %c0_i32 = arith.constant 0 : i32
    %c0_i32_0 = arith.constant 0 : i32
    return %arg0, %c0_i32 : i32, i32
  }
}

</mosaic_0001>

<bundles_post_ra>
// kernel: tpu_custom_call.1
= control target key start
LH: loop header
LB: loop body
LE: loop exit
PB: predicated region body
PF: predicated region fallthrough
CT: control target
= control target key end

     0   :  { %10 = vsyncpa [#allocation5], 0  ;;  %s4714_s0 = inlined_call_operand.hbm [shape: s8[2,384,384], index: 0, kind: input, shape index: {}]   ;;  %s4715_s1 = inlined_call_operand.hbm [shape: bf16[384,128], index: 1, kind: input, shape index: {}]   ;;  %s4716_s2 = inlined_call_operand.hbm [shape: bf16[384,128], index: 2, kind: input, shape index: {}]   ;;  %s4717_s3 = inlined_call_operand.vmem [shape: f32[384,128], index: 3, kind: input, shape index: {}]   ;;  %s4718_s4 = inlined_call_operand.vmem [shape: f32[384,2], index: 4, kind: input, shape index: {}]   ;;  %s4719_s5 = inlined_call_operand.hbm [shape: f32[384,128], index: 5, kind: output, shape index: {}]  }
   0x1   :  { %11 = vsyncpa [#allocation8], 0 }
   0x2   :  { %12 = vsyncpa [#allocation6], 0  ;;  %s3299_s18 = smov [#allocation7]   ;;  %s3205_s22 = scalar_lea.hbm %s4715_s1, 3072 }
   0x3   :  { %s30_s19 = sshll.u32 %s3299_s18, 4  ;;  %p3206_p0 = scmp.ne.s32.totalorder %s4715_s1, %s3205_s22  ;;  %s31_s19 = int_to_ptr.vmem [resolvable:$true] %s30_s19 }
   0x4   :  { %p3209_p1 = scmp.lt.u32.totalorder %s3205_s22, %s4715_s1 }
   0x6   :  { %p3211_p2 = pnand %p3209_p1, %p3206_p0 }
   0x8   :  { %3214 = shalt.err (!%p3211_p2)
}
   0x9   :  { %s3215_s27 = scalar_lea.vmem %s31_s19, 3072  ;;  %p3220_p4 = scmp.lt.s32.totalorder %s31_s19, %s31_s19 }
   0xa   :  { %p3216_p3 = scmp.ne.s32.totalorder %s31_s19, %s3215_s27  ;;  %p3221_p5 = scmp.lt.s32.totalorder %s3215_s27, %s3215_s27 }
   0xc   :  { %p3222_p6 = por %p3221_p5, %p3220_p4 }
   0xe   :  { %p3223_p7 = pnand %p3222_p6, %p3216_p3 }
  0x10   :  { %3226 = shalt.err (!%p3223_p7)
}
  0x11   :  { %s3300_s28 = smov 64   ;;  %s3301_s29 = smov 4  }
  0x12   :  { %36 = dma.hbm_to_vmem [thread:$0]  %s4715_s1, 3072, %s31_s19, [#allocation8], %s3300_s28, %s3300_s28, %s3301_s29  }
  0x13   :  { %s3302_s7 = smov [#allocation4]   ;;  %s3227_s11 = scalar_lea.hbm %s4714_s0, 9216 }
  0x14   :  { %s18_s8 = sshll.u32 %s3302_s7, 4  ;;  %p3228_p8 = scmp.ne.s32.totalorder %s4714_s0, %s3227_s11  ;;  %s19_s8 = int_to_ptr.vmem [resolvable:$true] %s18_s8 }
  0x15   :  { %p3231_p9 = scmp.lt.u32.totalorder %s3227_s11, %s4714_s0 }
  0x17   :  { %p3233_p10 = pnand %p3231_p9, %p3228_p8 }
  0x19   :  { %3236 = shalt.err (!%p3233_p10)
}
  0x1a   :  { %s3237_s16 = scalar_lea.vmem %s19_s8, 9216  ;;  %p3242_p12 = scmp.lt.s32.totalorder %s19_s8, %s19_s8 }
  0x1b   :  { %p3238_p11 = scmp.ne.s32.totalorder %s19_s8, %s3237_s16  ;;  %p3243_p13 = scmp.lt.s32.totalorder %s3237_s16, %s3237_s16 }
  0x1d   :  { %p3244_p0 = por %p3243_p13, %p3242_p12 }
  0x1f   :  { %p3245_p1 = pnand %p3244_p0, %p3238_p11 }
  0x21   :  { %3248 = shalt.err (!%p3245_p1)
}
  0x22   :  { %s3303_s1 = smov 384   ;;  %s3304_s17 = smov 24  }
  0x23   :  { %24 = dma.hbm_to_vmem [thread:$0]  %s4714_s0, 9216, %s19_s8, [#allocation5], %s3303_s1, %s3303_s1, %s3304_s17  }
  0x24   :  { %s3305_s20 = smov [#allocation9]   ;;  %s3249_s24 = scalar_lea.hbm %s4716_s2, 3072 }
  0x25   :  { %s42_s21 = sshll.u32 %s3305_s20, 4  ;;  %p3250_p2 = scmp.ne.s32.totalorder %s4716_s2, %s3249_s24  ;;  %s43_s21 = int_to_ptr.vmem [resolvable:$true] %s42_s21 }
  0x26   :  { %p3253_p3 = scmp.lt.u32.totalorder %s3249_s24, %s4716_s2 }
  0x28   :  { %p3255_p4 = pnand %p3253_p3, %p3250_p2 }
  0x2a   :  { %3258 = shalt.err (!%p3255_p4)
}
  0x2b   :  { %s3259_s6 = scalar_lea.vmem %s43_s21, 3072  ;;  %p3264_p6 = scmp.lt.s32.totalorder %s43_s21, %s43_s21 }
  0x2c   :  { %p3260_p5 = scmp.ne.s32.totalorder %s43_s21, %s3259_s6  ;;  %p3265_p7 = scmp.lt.s32.totalorder %s3259_s6, %s3259_s6 }
  0x2e   :  { %p3266_p8 = por %p3265_p7, %p3264_p6 }
  0x30   :  { %p3267_p9 = pnand %p3266_p8, %p3260_p5 }
  0x32   :  { %3270 = shalt.err (!%p3267_p9)
}
  0x33   :  { %48 = dma.hbm_to_vmem [thread:$0]  %s4716_s2, 3072, %s43_s21, [#allocation8], %s3300_s28, %s3300_s28, %s3301_s29  }
  0x34   :  { %3293 = dma.done.wait [#allocation5], 9216  }
  0x35   :  { %3294 = vsyncadd [#allocation5], 4294958080 }
  0x36   :  { %3295 = dma.done.wait [#allocation8], 6144  }
  0x37   :  { %3296 = vsyncadd [#allocation8], 4294961152  ;;  %v3306_v0 = vmov 0   ;;  %v3157_v1 = vld [vmem:[#allocation7] sm:$0xff]   ;;  %v3159_v3 = vld [vmem:[#allocation7 + $0x8] sm:$0xff]  }
  0x38   :  { %620 = vmatprep.subr.bf16.mxu0 %v3306_v0  ;;  %3154 = vset.pattern.permute.xlu1 %v3306_v0  ;;  %v3158_v2 = vld [vmem:[#allocation7 + $0x80] sm:$0xff]   ;;  %v3160_v4 = vld [vmem:[#allocation7 + $0x88] sm:$0xff]   ;;  %v3162_v5 = vld [vmem:[#allocation7 + $0x90] sm:$0xff]  }
  0x39   :  { %3153 = vset.pattern.permute.xlu0 %v3306_v0  ;;  %621 = vmatpush1.bf16.msra.mxu0 %v3157_v1  ;;  %v3161_v6 = vld [vmem:[#allocation7 + $0x10] sm:$0xff]   ;;  %v3164_v7 = vld [vmem:[#allocation7 + $0x98] sm:$0xff]   ;;  %v3166_v9 = vld [vmem:[#allocation7 + $0xa0] sm:$0xff]  }
  0x3a   :  { %2997 = vmatprep.subr.bf16.mxu1 %v3158_v2  ;;  %622 = vmatprep.subr.bf16.mxu0 %v3306_v0  ;;  %v3163_v8 = vld [vmem:[#allocation7 + $0x18] sm:$0xff]   ;;  %v3165_v10 = vld [vmem:[#allocation7 + $0x20] sm:$0xff]   ;;  %v165_v11 = vld [vmem:[#allocation4 + $0x10] sm:$0xff] }
  0x3b   :  { %2998 = vmatpush3.bf16.msra.mxu1 %v3158_v2  ;;  %v3168_v12 = vld [vmem:[#allocation7 + $0xa8] sm:$0xff]   ;;  %v201_v13 = vunpack.c.l.s8.bf16 %v165_v11  ;;  %v3170_v15 = vld [vmem:[#allocation7 + $0xb0] sm:$0xff]   ;;  %v3172_v17 = vld [vmem:[#allocation7 + $0xb8] sm:$0xff]   ;;  %v204_v22 = vunpack.c.h.s8.bf16 %v165_v11 }
  0x3c   :  { %2999 = vmatprep.subr.bf16.mxu1 %v3160_v4  ;;  %v3167_v14 = vld [vmem:[#allocation7 + $0x28] sm:$0xff]   ;;  %v3169_v16 = vld [vmem:[#allocation7 + $0x30] sm:$0xff]   ;;  %v3171_v18 = vld [vmem:[#allocation7 + $0x38] sm:$0xff]  }
  0x3d   :  { %623 = vmatpush1.bf16.msra.mxu0 %v3159_v3  ;;  %3013 = vmatprep.mubr.bf16.mxu1 %v201_v13  ;;  %v168_v19 = vld [vmem:[#allocation4 + $0x28] sm:$0xff]  ;;  %v3173_v20 = vld [vmem:[#allocation7 + $0x40] sm:$0xff]   ;;  %v3177_v29 = vld [vmem:[#allocation7 + $0x50] sm:$0xff]  }
  0x3e   :  { %624 = vmatprep.subr.bf16.mxu0 %v3306_v0  ;;  %v3393_v21 = vld [vmem:[#allocation4 + $0x8] sm:$0xff]  ;;  %v3174_v24 = vld [vmem:[#allocation9] sm:$0xff]   ;;  %v207_v25 = vunpack.c.l.s8.bf16 %v168_v19  ;;  %v210_v30 = vunpack.c.h.s8.bf16 %v168_v19  ;;  %v3179_v31 = vld [vmem:[#allocation9 + $0x10] sm:$0xff]  }
  0x3f   :  { %3000 = vmatpush3.bf16.msra.mxu1 %v3160_v4  ;;  %v200_v23 = vunpack.c.l.s8.bf16 %v3393_v21  ;;  %v3175_v26 = vld [vmem:[#allocation7 + $0x48] sm:$0xff]   ;;  %v171_v28 = vld [vmem:[#allocation4 + $0x40] sm:$0xff]  ;;  %v3178_v33 = vld [vmem:[#allocation7 + $0x58] sm:$0xff]   ;;  %v203_v59 = vunpack.c.h.s8.bf16 %v3393_v21 }
  0x40   :  { %3001 = vmatprep.subr.bf16.mxu1 %v3162_v5  ;;  %v3176_v27 = vld [vmem:[#allocation9 + $0x8] sm:$0xff]   ;;  %v213_v32 = vunpack.c.l.s8.bf16 %v171_v28  ;;  %v3181_v34 = vld [vmem:[#allocation9 + $0x18] sm:$0xff]   ;;  %v3180_v36 = vld [vmem:[#allocation7 + $0x60] sm:$0xff]   ;;  %v216_v37 = vunpack.c.h.s8.bf16 %v171_v28 }
  0x41   :  { %625 = vmatpush1.bf16.msra.mxu0 %v3161_v6  ;;  %652 = vmatprep.mubr.bf16.mxu0 %v200_v23  ;;  %v174_v35 = vld [vmem:[#allocation4 + $0x58] sm:$0xff]  ;;  %v3184_v39 = vld [vmem:[#allocation9 + $0x20] sm:$0xff]   ;;  %v3182_v40 = vld [vmem:[#allocation7 + $0x68] sm:$0xff]  }
  0x42   :  { %626 = vmatprep.subr.bf16.mxu0 %v3306_v0  ;;  %v219_v38 = vunpack.c.l.s8.bf16 %v174_v35  ;;  %v3186_v41 = vld [vmem:[#allocation9 + $0x28] sm:$0xff]   ;;  %v3410_v42 = vld [vmem:[%s4718_s4 + $0x10] sm:$0xff]  ;;  %v3415_v43 = vld [vmem:[%s4718_s4] sm:$0xff]  ;;  %v222_v47 = vunpack.c.h.s8.bf16 %v174_v35 }
  0x43   :  { %3002 = vmatpush3.bf16.msra.mxu1 %v3162_v5  ;;  %v177_v44 = vld [vmem:[#allocation4 + $0x70] sm:$0xff]  ;;  %2111 = vperm.xlu1 %3154, %v3410_v42   ;;  %v3423_v46 = vld [vmem:[%s4718_s4 + $0x18] sm:$0xff]  ;;  %v3429_v48 = vld [vmem:[%s4718_s4 + $0x8] sm:$0xff] }
  0x44   :  { %3003 = vmatprep.subr.bf16.mxu1 %v3164_v7  ;;  %v3183_v45 = vld [vmem:[#allocation7 + $0x70] sm:$0xff]   ;;  %2101 = vperm.xlu0 %3153, %v3415_v43   ;;  %v225_v49 = vunpack.c.l.s8.bf16 %v177_v44  ;;  %v3185_v51 = vld [vmem:[#allocation7 + $0x78] sm:$0xff]   ;;  %v163_v52 = vld [vmem:[#allocation4] sm:$0xff]  ;;  %v228_v60 = vunpack.c.h.s8.bf16 %v177_v44 }
  0x45   :  { %627 = vmatpush1.bf16.msra.mxu0 %v3163_v8  ;;  %v3188_v50 = vld [vmem:[#allocation9 + $0x30] sm:$0xff]   ;;  %v3437_v53 = vld [vmem:[%s4718_s4 + $0x28] sm:$0xff]  ;;  %v3440_v54 = vld [vmem:[#allocation9 + $0x80] sm:$0xff]   ;;  %v199_v57 = vunpack.c.l.s8.bf16 %v163_v52  ;;  %v202_v6 = vunpack.c.h.s8.bf16 %v163_v52 }
  0x46   :  { %628 = vmatprep.subr.bf16.mxu0 %v3306_v0  ;;  %v3445_v55 = vld [vmem:[%s4718_s4 + $0x20] sm:$0xff]  ;;  %v3189_v56 = vld [vmem:[#allocation9 + $0x38] sm:$0xff]   ;;  %v180_v58 = vld [vmem:[#allocation4 + $0x88] sm:$0xff] }
  0x47   :  { %3004 = vmatpush3.bf16.msra.mxu1 %v3164_v7  ;;  %2116 = vperm.xlu1 %3154, %v3423_v46   ;;  %v3452_v61 = vld [vmem:[#allocation9 + $0x88] sm:$0xff]   ;;  %v231_v62 = vunpack.c.l.s8.bf16 %v180_v58  ;;  %v3190_v63 = vld [vmem:[#allocation9 + $0x40] sm:$0xff]   ;;  %v3459_v1 = vld [vmem:[%s4718_s4 + $0x38] sm:$0xff] }
  0x48   :  { %3005 = vmatprep.subr.bf16.mxu1 %v3166_v9  ;;  %2106 = vperm.xlu0 %3153, %v3429_v48   ;;  %v167_v2 = vld [vmem:[#allocation4 + $0x20] sm:$0xff]  ;;  %v3462_v3 = vld [vmem:[#allocation9 + $0x90] sm:$0xff]   ;;  %v3191_v5 = vld [vmem:[#allocation9 + $0x48] sm:$0xff]  }
  0x49   :  { %629 = vmatpush1.bf16.msra.mxu0 %v3165_v10  ;;  %v3467_v4 = vld [vmem:[%s4718_s4 + $0x30] sm:$0xff]  ;;  %v183_v7 = vld [vmem:[#allocation4 + $0xa0] sm:$0xff]  ;;  %v206_v8 = vunpack.c.l.s8.bf16 %v167_v2  ;;  %v3474_v10 = vld [vmem:[#allocation9 + $0x98] sm:$0xff]  }
  0x4a   :  { %630 = vmatprep.subr.bf16.mxu0 %v3306_v0  ;;  %v237_v11 = vunpack.c.l.s8.bf16 %v183_v7  ;;  %v166_v13 = vld [vmem:[#allocation4 + $0x18] sm:$0xff]  ;;  %v240_v21 = vunpack.c.h.s8.bf16 %v183_v7  ;;  %v3514_v28 = vld [vmem:[%s4718_s4 + $0x68] sm:$0xff]  ;;  %v3590_v7 = vld [vmem:[%s4718_s4 + $0xb0] sm:$0xff] }
  0x4b   :  { %3006 = vmatpush3.bf16.msra.mxu1 %v3166_v9  ;;  %2126 = vperm.xlu1 %3154, %v3437_v53   ;;  %v234_v9 = vunpack.c.h.s8.bf16 %v180_v58  ;;  %v186_v19 = vld [vmem:[#allocation4 + $0xb8] sm:$0xff]  ;;  %v3572_v58 = vld [vmem:[%s4718_s4 + $0xa8] sm:$0xff] }
  0x4c   :  { %3007 = vmatprep.subr.bf16.mxu1 %v3168_v12  ;;  %2121 = vperm.xlu0 %3153, %v3445_v55   ;;  %v243_v23 = vunpack.c.l.s8.bf16 %v186_v19  ;;  %v3529_v35 = vld [vmem:[%s4718_s4 + $0x78] sm:$0xff] }
  0x4d   :  { %631 = vmatpush1.bf16.msra.mxu0 %v3167_v14  ;;  %v3481_v14 = vld [vmem:[%s4718_s4 + $0x48] sm:$0xff]  ;;  %v3199_v44 = vld [vmem:[#allocation9 + $0x78] sm:$0xff]  }
  0x4e   :  { %632 = vmatprep.subr.bf16.mxu0 %v3306_v0  ;;  %v3559_v52 = vld [vmem:[%s4718_s4 + $0x98] sm:$0xff] }
  0x4f   :  { %3008 = vmatpush3.bf16.msra.mxu1 %v3168_v12  ;;  %2136 = vperm.xlu1 %3154, %v3459_v1   ;;  %v3193_v12 = vld [vmem:[#allocation9 + $0x50] sm:$0xff]  }
  0x50   :  { %3009 = vmatprep.subr.bf16.mxu1 %v3170_v15  ;;  %2131 = vperm.xlu0 %3153, %v3467_v4  }
  0x51   :  { %633 = vmatpush1.bf16.msra.mxu0 %v3169_v16  ;;  %v3489_v16 = vld [vmem:[#allocation9 + $0xa0] sm:$0xff]  }
  0x52   :  { %634 = vmatprep.subr.bf16.mxu0 %v3306_v0 }
  0x53   :  { %3010 = vmatpush3.bf16.msra.mxu1 %v3170_v15  ;;  %v3487_v15 = vld [vmem:[%s4718_s4 + $0x40] sm:$0xff]  ;;  %2146 = vperm.xlu1 %3154, %v3481_v14  }
  0x54   :  { %3011 = vmatprep.subr.bf16.mxu1 %v3172_v17  ;;  %2141 = vperm.xlu0 %3153, %v3487_v15  }
  0x55   :  { %635 = vmatpush1.bf16.msra.mxu0 %v3171_v18  ;;  %v205_v18 = vunpack.c.l.s8.bf16 %v166_v13 }
  0x56   :  { %636 = vmatprep.subr.bf16.mxu0 %v3306_v0 }
  0x57   :  { %3012 = vmatpush3.bf16.msra.mxu1 %v3172_v17  ;;  %v3194_v17 = vld [vmem:[#allocation9 + $0x58] sm:$0xff]  }
  0x58   :  { %1406 = vmatprep.subr.bf16.mxu1 %v3306_v0 }
  0x59   :  { %637 = vmatpush1.bf16.msra.mxu0 %v3173_v20  ;;  %v209_v20 = vunpack.c.h.s8.bf16 %v167_v2 }
  0x5a   :  { %3014 = vmatmul.mubr.bf16.vlgmr.msra.gmra.mrb[0].mxu1 %v204_v22  ;;  %638 = vmatprep.subr.bf16.mxu0 %v3306_v0  ;;  %v3498_v22 = vld [vmem:[%s4718_s4 + $0x58] sm:$0xff] }
  0x5b   :  { %1407 = vmatpush1.bf16.msra.mxu1 %v3174_v24  ;;  %3017 = vmatprep.mubr.bf16.mxu1 %v207_v25  ;;  %v3195_v24 = vld [vmem:[#allocation9 + $0x60] sm:$0xff]   ;;  %v3504_v25 = vld [vmem:[%s4718_s4 + $0x50] sm:$0xff] }
  0x5c   :  { %1408 = vmatprep.subr.bf16.mxu1 %v3306_v0  ;;  %2156 = vperm.xlu1 %3154, %v3498_v22  }
  0x5d   :  { %639 = vmatpush1.bf16.msra.mxu0 %v3175_v26  ;;  %v3508_v26 = vld [vmem:[#allocation9 + $0xa8] sm:$0xff]   ;;  %2151 = vperm.xlu0 %3153, %v3504_v25  }
  0x5e   :  { %640 = vmatprep.subr.bf16.mxu0 %v3306_v0 }
  0x5f   :  { %1409 = vmatpush1.bf16.msra.mxu1 %v3176_v27  ;;  %v170_v27 = vld [vmem:[#allocation4 + $0x38] sm:$0xff] }
  0x60   :  { %1410 = vmatprep.subr.bf16.mxu1 %v3306_v0  ;;  %2166 = vperm.xlu1 %3154, %v3514_v28  }
  0x61   :  { %641 = vmatpush1.bf16.msra.mxu0 %v3177_v29  ;;  %v3196_v29 = vld [vmem:[#allocation9 + $0x68] sm:$0xff]  }
  0x62   :  { %3018 = vmatmul.mubr.bf16.gmra.mrb[4].mxu1 %v210_v30  ;;  %642 = vmatprep.subr.bf16.mxu0 %v3306_v0  ;;  %v3519_v30 = vld [vmem:[%s4718_s4 + $0x60] sm:$0xff] }
  0x63   :  { %1411 = vmatpush1.bf16.msra.mxu1 %v3179_v31  ;;  %3021 = vmatprep.mubr.bf16.mxu1 %v213_v32  ;;  %v208_v31 = vunpack.c.h.s8.bf16 %v166_v13  ;;  %v189_v32 = vld [vmem:[#allocation4 + $0xd0] sm:$0xff] }
  0x64   :  { %1412 = vmatprep.subr.bf16.mxu1 %v3306_v0  ;;  %2161 = vperm.xlu0 %3153, %v3519_v30  }
  0x65   :  { %643 = vmatpush1.bf16.msra.mxu0 %v3178_v33  ;;  %v212_v33 = vunpack.c.l.s8.bf16 %v170_v27  ;;  %2176 = vperm.xlu1 %3154, %v3529_v35  }
  0x66   :  { %644 = vmatprep.subr.bf16.mxu0 %v3306_v0 }
  0x67   :  { %1413 = vmatpush1.bf16.msra.mxu1 %v3181_v34  ;;  %v246_v34 = vunpack.c.h.s8.bf16 %v186_v19 }
  0x68   :  { %1414 = vmatprep.subr.bf16.mxu1 %v3306_v0 }
  0x69   :  { %645 = vmatpush1.bf16.msra.mxu0 %v3180_v36  ;;  %v249_v36 = vunpack.c.l.s8.bf16 %v189_v32 }
  0x6a   :  { %3022 = vmatmul.mubr.bf16.gmra.mrb[8].mxu1 %v216_v37  ;;  %646 = vmatprep.subr.bf16.mxu0 %v3306_v0  ;;  %v3198_v37 = vld [vmem:[#allocation9 + $0x70] sm:$0xff]  }
  0x6b   :  { %3025 = vmatprep.mubr.bf16.mxu1 %v219_v38  ;;  %1415 = vmatpush1.bf16.msra.mxu1 %v3184_v39  ;;  %v3534_v38 = vld [vmem:[%s4718_s4 + $0x70] sm:$0xff] }
  0x6c   :  { %1416 = vmatprep.subr.bf16.mxu1 %v3306_v0  ;;  %v169_v39 = vld [vmem:[#allocation4 + $0x30] sm:$0xff]  ;;  %2171 = vperm.xlu0 %3153, %v3534_v38  }
  0x6d   :  { %647 = vmatpush1.bf16.msra.mxu0 %v3182_v40  ;;  %v3538_v40 = vld [vmem:[#allocation9 + $0xb0] sm:$0xff]  }
  0x6e   :  { %648 = vmatprep.subr.bf16.mxu0 %v3306_v0 }
  0x6f   :  { %1417 = vmatpush1.bf16.msra.mxu1 %v3186_v41  ;;  %v3544_v41 = vld [vmem:[%s4718_s4 + $0x88] sm:$0xff] }
  0x70   :  { %1418 = vmatprep.subr.bf16.mxu1 %v3306_v0  ;;  %2186 = vperm.xlu1 %3154, %v3544_v41  }
  0x71   :  { %649 = vmatpush1.bf16.msra.mxu0 %v3183_v45  ;;  %v3549_v45 = vld [vmem:[%s4718_s4 + $0x80] sm:$0xff] }
  0x72   :  { %3026 = vmatmul.mubr.bf16.gmra.mrb[12].mxu1 %v222_v47  ;;  %650 = vmatprep.subr.bf16.mxu0 %v3306_v0  ;;  %v211_v47 = vunpack.c.l.s8.bf16 %v169_v39 }
  0x73   :  { %3029 = vmatprep.mubr.bf16.mxu1 %v225_v49  ;;  %1419 = vmatpush1.bf16.msra.mxu1 %v3188_v50  ;;  %v192_v49 = vld [vmem:[#allocation4 + $0xe8] sm:$0xff]  ;;  %v215_v50 = vunpack.c.h.s8.bf16 %v170_v27 }
  0x74   :  { %1420 = vmatprep.subr.bf16.mxu1 %v3306_v0  ;;  %2181 = vperm.xlu0 %3153, %v3549_v45   ;;  %v258_v2 = vunpack.c.h.s8.bf16 %v192_v49  ;;  %v3625_v27 = vld [vmem:[%s4718_s4 + $0xe8] sm:$0xff] }
  0x75   :  { %651 = vmatpush1.bf16.msra.mxu0 %v3185_v51  ;;  %v252_v51 = vunpack.c.h.s8.bf16 %v189_v32  ;;  %2196 = vperm.xlu1 %3154, %v3559_v52   ;;  %v273_v32 = vld [vmem:[#allocation4 + $0x128] sm:$0xff] }
  0x76   :  { %3061 = vmatprep.subr.bf16.mxu0 %v3440_v54 }
  0x77   :  { %1421 = vmatpush1.bf16.msra.mxu1 %v3189_v56  ;;  %v255_v56 = vunpack.c.l.s8.bf16 %v192_v49  ;;  %v272_v49 = vld [vmem:[#allocation4 + $0x120] sm:$0xff] }
  0x78   :  { %653 = vmatmul.mubr.bf16.vlgmr.msra.gmra.mrb[0].mxu0 %v199_v57  ;;  %1422 = vmatprep.subr.bf16.mxu1 %v3306_v0  ;;  %v173_v57 = vld [vmem:[#allocation4 + $0x50] sm:$0xff] }
  0x79   :  { %3062 = vmatpush3.bf16.msra.mxu0 %v3440_v54  ;;  %660 = vmatprep.mubr.bf16.mxu0 %v203_v59  ;;  %v3577_v59 = vld [vmem:[%s4718_s4 + $0xa0] sm:$0xff] }
  0x7a   :  { %3030 = vmatmul.mubr.bf16.gmra.mrb[16].mxu1 %v228_v60  ;;  %3063 = vmatprep.subr.bf16.mxu0 %v3452_v61  ;;  %v214_v60 = vunpack.c.h.s8.bf16 %v169_v39  ;;  %v3642_v39 = vld [vmem:[%s4718_s4 + $0xf0] sm:$0xff] }
  0x7b   :  { %3033 = vmatprep.mubr.bf16.mxu1 %v231_v62  ;;  %1423 = vmatpush1.bf16.msra.mxu1 %v3190_v63  ;;  %v195_v62 = vld [vmem:[#allocation4 + $0x100] sm:$0xff]  ;;  %v218_v63 = vunpack.c.l.s8.bf16 %v173_v57 }
  0x7c   :  { %1424 = vmatprep.subr.bf16.mxu1 %v3306_v0  ;;  %2206 = vperm.xlu1 %3154, %v3572_v58   ;;  %v264_v19 = vunpack.c.h.s8.bf16 %v195_v62 }
  0x7d   :  { %3064 = vmatpush3.bf16.msra.mxu0 %v3452_v61 }
  0x7e   :  { %3065 = vmatprep.subr.bf16.mxu0 %v3462_v3 }
  0x7f   :  { %1425 = vmatpush1.bf16.msra.mxu1 %v3191_v5  ;;  %v3585_v5 = vld [vmem:[%s4718_s4 + $0xb8] sm:$0xff] }
  0x80   :  { %661 = vmatmul.mubr.bf16.gmra.mrb[4].mxu0 %v202_v6  ;;  %1426 = vmatprep.subr.bf16.mxu1 %v3306_v0  ;;  %v261_v6 = vunpack.c.l.s8.bf16 %v195_v62  ;;  %v312_v62 = vunpack.c.h.s8.bf16 %v273_v32 }
  0x81   :  { %668 = vmatprep.mubr.bf16.mxu0 %v206_v8  ;;  %3066 = vmatpush3.bf16.msra.mxu0 %v3462_v3  ;;  %v172_v8 = vld [vmem:[#allocation4 + $0x48] sm:$0xff] }
  0x82   :  { %3034 = vmatmul.mubr.bf16.gmra.mrb[20].mxu1 %v234_v9  ;;  %3067 = vmatprep.subr.bf16.mxu0 %v3474_v10  ;;  %v3597_v9 = vld [vmem:[%s4718_s4 + $0xc8] sm:$0xff]  ;;  %v217_v13 = vunpack.c.l.s8.bf16 %v172_v8 }
  0x83   :  { %3037 = vmatprep.mubr.bf16.mxu1 %v237_v11  ;;  %1427 = vmatpush1.bf16.msra.mxu1 %v3193_v12  ;;  %v3599_v11 = vld [vmem:[#allocation9 + $0xb8] sm:$0xff]   ;;  %v3604_v12 = vld [vmem:[%s4718_s4 + $0xc0] sm:$0xff] }
  0x84   :  { %1428 = vmatprep.subr.bf16.mxu1 %v3306_v0  ;;  %2216 = vperm.xlu1 %3154, %v3585_v5  }
  0x85   :  { %3068 = vmatpush3.bf16.msra.mxu0 %v3474_v10 }
  0x86   :  { %3069 = vmatprep.subr.bf16.mxu0 %v3489_v16 }
  0x87   :  { %1429 = vmatpush1.bf16.msra.mxu1 %v3194_v17  ;;  %v198_v17 = vld [vmem:[#allocation4 + $0x118] sm:$0xff] }
  0x88   :  { %669 = vmatmul.mubr.bf16.gmra.mrb[8].mxu0 %v205_v18  ;;  %1430 = vmatprep.subr.bf16.mxu1 %v3306_v0  ;;  %v221_v18 = vunpack.c.h.s8.bf16 %v173_v57  ;;  %v308_v57 = vunpack.c.l.s8.bf16 %v272_v49 }
  0x89   :  { %676 = vmatprep.mubr.bf16.mxu0 %v209_v20  ;;  %3070 = vmatpush3.bf16.msra.mxu0 %v3489_v16  ;;  %v3613_v20 = vld [vmem:[%s4718_s4 + $0xd8] sm:$0xff] }
  0x8a   :  { %3038 = vmatmul.mubr.bf16.gmra.mrb[24].mxu1 %v240_v21  ;;  %3071 = vmatprep.subr.bf16.mxu0 %v3508_v26  ;;  %v267_v21 = vunpack.c.l.s8.bf16 %v198_v17 }
  0x8b   :  { %3041 = vmatprep.mubr.bf16.mxu1 %v243_v23  ;;  %1431 = vmatpush1.bf16.msra.mxu1 %v3195_v24  ;;  %v3618_v23 = vld [vmem:[%s4718_s4 + $0xd0] sm:$0xff]  ;;  %v176_v24 = vld [vmem:[#allocation4 + $0x68] sm:$0xff] }
  0x8c   :  { %1432 = vmatprep.subr.bf16.mxu1 %v3306_v0  ;;  %2226 = vperm.xlu1 %3154, %v3597_v9  }
  0x8d   :  { %3072 = vmatpush3.bf16.msra.mxu0 %v3508_v26 }
  0x8e   :  { %3073 = vmatprep.subr.bf16.mxu0 %v3538_v40 }
  0x8f   :  { %1433 = vmatpush1.bf16.msra.mxu1 %v3196_v29  ;;  %v3630_v29 = vld [vmem:[%s4718_s4 + $0xe0] sm:$0xff] }
  0x90   :  { %677 = vmatmul.mubr.bf16.gmra.mrb[12].mxu0 %v208_v31  ;;  %1434 = vmatprep.subr.bf16.mxu1 %v3306_v0  ;;  %v220_v31 = vunpack.c.h.s8.bf16 %v172_v8  ;;  %v3679_v8 = vld [vmem:[%s4718_s4 + $0x120] sm:$0xff] }
  0x91   :  { %684 = vmatprep.mubr.bf16.mxu0 %v212_v33  ;;  %3074 = vmatpush3.bf16.msra.mxu0 %v3538_v40  ;;  %v224_v33 = vunpack.c.l.s8.bf16 %v176_v24 }
  0x92   :  { %3042 = vmatmul.mubr.bf16.gmra.mrb[28].mxu1 %v246_v34  ;;  %3075 = vmatprep.subr.bf16.mxu0 %v3599_v11  ;;  %v270_v34 = vunpack.c.h.s8.bf16 %v198_v17  ;;  %v276_v17 = vld [vmem:[#allocation4 + $0x140] sm:$0xff] }
  0x93   :  { %3045 = vmatprep.mubr.bf16.mxu1 %v249_v36  ;;  %1435 = vmatpush1.bf16.msra.mxu1 %v3198_v37  ;;  %v3637_v36 = vld [vmem:[%s4718_s4 + $0xf8] sm:$0xff]  ;;  %v309_v37 = vunpack.c.l.s8.bf16 %v273_v32  ;;  %v3701_v32 = vld [vmem:[%s4718_s4 + $0x148] sm:$0xff] }
  0x94   :  { %1436 = vmatprep.subr.bf16.mxu1 %v3306_v0  ;;  %v3564_v0 = vld [vmem:[%s4718_s4 + $0x90] sm:$0xff]  ;;  %2236 = vperm.xlu1 %3154, %v3613_v20  }
  0x95   :  { %2191 = vperm.xlu0 %3153, %v3564_v0   ;;  %3076 = vmatpush3.bf16.msra.mxu0 %v3599_v11 }
  0x97   :  { %1437 = vmatpush1.bf16.msra.mxu1 %v3199_v44  ;;  %v175_v44 = vld [vmem:[#allocation4 + $0x60] sm:$0xff] }
  0x98   :  { %685 = vmatmul.mubr.bf16.gmra.mrb[16].mxu0 %v211_v47  ;;  %3125 = vmatprep.subr.bf16.mxu1 %v3440_v54  ;;  %v3649_v47 = vld [vmem:[%s4718_s4 + $0x108] sm:$0xff] }
  0x99   :  { %692 = vmatprep.mubr.bf16.mxu0 %v215_v50  ;;  %2201 = vperm.xlu0 %3153, %v3577_v59   ;;  %v3654_v50 = vld [vmem:[%s4718_s4 + $0x100] sm:$0xff] }
  0x9a   :  { %3046 = vmatmul.mubr.bf16.gmra.mrb[32].mxu1 %v252_v51  ;;  %2246 = vperm.xlu1 %3154, %v3625_v27   ;;  %v223_v51 = vunpack.c.l.s8.bf16 %v175_v44 }
  0x9b   :  { %3049 = vmatprep.mubr.bf16.mxu1 %v255_v56  ;;  %v227_v56 = vunpack.c.h.s8.bf16 %v176_v24  ;;  %v3693_v24 = vld [vmem:[%s4718_s4 + $0x130] sm:$0xff] }
  0x9d   :  { %2211 = vperm.xlu0 %3153, %v3590_v7  }
  0x9e   :  { %2256 = vperm.xlu1 %3154, %v3637_v36  }
  0xa0   :  { %693 = vmatmul.mubr.bf16.gmra.mrb[20].mxu0 %v214_v60  ;;  %v3661_v60 = vld [vmem:[%s4718_s4 + $0x118] sm:$0xff] }
  0xa1   :  { %700 = vmatprep.mubr.bf16.mxu0 %v218_v63  ;;  %2221 = vperm.xlu0 %3153, %v3604_v12   ;;  %v3666_v63 = vld [vmem:[%s4718_s4 + $0x110] sm:$0xff] }
  0xa2   :  { %3050 = vmatmul.mubr.bf16.gmra.mrb[36].mxu1 %v258_v2  ;;  %2266 = vperm.xlu1 %3154, %v3649_v47   ;;  %v179_v2 = vld [vmem:[#allocation4 + $0x80] sm:$0xff] }
  0xa3   :  { %3053 = vmatprep.mubr.bf16.mxu1 %v261_v6  ;;  %v3673_v6 = vld [vmem:[%s4718_s4 + $0x128] sm:$0xff] }
  0xa5   :  { %2231 = vperm.xlu0 %3153, %v3618_v23  }
  0xa6   :  { %2276 = vperm.xlu1 %3154, %v3661_v60  }
  0xa8   :  { %701 = vmatmul.mubr.bf16.gmra.mrb[24].mxu0 %v217_v13  ;;  %v226_v13 = vunpack.c.h.s8.bf16 %v175_v44 }
  0xa9   :  { %708 = vmatprep.mubr.bf16.mxu0 %v221_v18  ;;  %2241 = vperm.xlu0 %3153, %v3630_v29   ;;  %v230_v18 = vunpack.c.l.s8.bf16 %v179_v2 }
  0xaa   :  { %3054 = vmatmul.mubr.bf16.gmra.mrb[40].mxu1 %v264_v19  ;;  %2286 = vperm.xlu1 %3154, %v3673_v6   ;;  %v311_v19 = vunpack.c.h.s8.bf16 %v272_v49  ;;  %v3715_v49 = vld [vmem:[%s4718_s4 + $0x158] sm:$0xff] }
  0xab   :  { %3057 = vmatprep.mubr.bf16.mxu1 %v267_v21  ;;  %v315_v21 = vunpack.c.l.s8.bf16 %v276_v17 }
  0xad   :  { %2251 = vperm.xlu0 %3153, %v3642_v39  }
  0xb0   :  { %709 = vmatmul.mubr.bf16.gmra.mrb[28].mxu0 %v220_v31  ;;  %v178_v31 = vld [vmem:[#allocation4 + $0x78] sm:$0xff] }
  0xb1   :  { %716 = vmatprep.mubr.bf16.mxu0 %v224_v33  ;;  %2261 = vperm.xlu0 %3153, %v3654_v50   ;;  %v3707_v33 = vld [vmem:[%s4718_s4 + $0x140] sm:$0xff] }
  0xb2   :  { %3058 = vmatmul.mubr.bf16.gmra.mrb[44].mxu1 %v270_v34  ;;  %v229_v34 = vunpack.c.l.s8.bf16 %v178_v31 }
  0xb3   :  { %1438 = vmatprep.mubr.bf16.mxu1 %v309_v37  ;;  %v233_v37 = vunpack.c.h.s8.bf16 %v179_v2  ;;  %v279_v2 = vld [vmem:[#allocation4 + $0x158] sm:$0xff] }
  0xb5   :  { %2271 = vperm.xlu0 %3153, %v3666_v63  }
  0xb8   :  { %717 = vmatmul.mubr.bf16.gmra.mrb[32].mxu0 %v223_v51  ;;  %v3721_v51 = vld [vmem:[%s4718_s4 + $0x150] sm:$0xff] }
  0xb9   :  { %724 = vmatprep.mubr.bf16.mxu0 %v227_v56  ;;  %2281 = vperm.xlu0 %3153, %v3679_v8   ;;  %v182_v56 = vld [vmem:[#allocation4 + $0x98] sm:$0xff] }
  0xba   :  { %1439 = vmatmul.mubr.bf16.vlgmr.msra.gmra.mrb[48].mxu1 %v308_v57  ;;  %v3729_v57 = vld [vmem:[%s4718_s4 + $0x168] sm:$0xff] }
  0xbb   :  { %3133 = vmatpush3.bf16.msra.mxu1 %v3440_v54  ;;  %1446 = vmatprep.mubr.bf16.mxu1 %v312_v62  ;;  %v3687_v54 = vld [vmem:[%s4718_s4 + $0x138] sm:$0xff]  ;;  %v232_v62 = vunpack.c.h.s8.bf16 %v178_v31  ;;  %v278_v31 = vld [vmem:[#allocation4 + $0x150] sm:$0xff] }
  0xbc   :  { %3126 = vmatprep.subr.bf16.mxu1 %v3452_v61  ;;  %2296 = vperm.xlu1 %3154, %v3687_v54  }
  0xbd   :  { %2291 = vperm.xlu0 %3153, %v3693_v24  }
  0xbf   :  { %3134 = vmatpush3.bf16.msra.mxu1 %v3452_v61  ;;  %v275_v61 = vld [vmem:[#allocation4 + $0x138] sm:$0xff] }
  0xc0   :  { %725 = vmatmul.mubr.bf16.gmra.mrb[36].mxu0 %v226_v13  ;;  %3127 = vmatprep.subr.bf16.mxu1 %v3462_v3  ;;  %v314_v44 = vunpack.c.l.s8.bf16 %v275_v61  ;;  %v236_v13 = vunpack.c.l.s8.bf16 %v182_v56 }
  0xc1   :  { %732 = vmatprep.mubr.bf16.mxu0 %v230_v18  ;;  %2306 = vperm.xlu1 %3154, %v3701_v32   ;;  %v3743_v18 = vld [vmem:[%s4718_s4 + $0x178] sm:$0xff] }
  0xc2   :  { %1447 = vmatmul.mubr.bf16.gmra.mrb[52].mxu1 %v311_v19  ;;  %2301 = vperm.xlu0 %3153, %v3707_v33   ;;  %v321_v19 = vunpack.c.l.s8.bf16 %v279_v2 }
  0xc3   :  { %1454 = vmatprep.mubr.bf16.mxu1 %v315_v21  ;;  %3135 = vmatpush3.bf16.msra.mxu1 %v3462_v3  ;;  %v318_v3 = vunpack.c.h.s8.bf16 %v276_v17  ;;  %v317_v17 = vunpack.c.h.s8.bf16 %v275_v61  ;;  %v181_v21 = vld [vmem:[#allocation4 + $0x90] sm:$0xff] }
  0xc4   :  { %3128 = vmatprep.subr.bf16.mxu1 %v3474_v10  ;;  %v235_v61 = vunpack.c.l.s8.bf16 %v181_v21 }
  0xc5   :  { %2316 = vperm.xlu1 %3154, %v3715_v49  }
  0xc6   :  { %2311 = vperm.xlu0 %3153, %v3721_v51  }
  0xc7   :  { %3136 = vmatpush3.bf16.msra.mxu1 %v3474_v10  ;;  %v3734_v10 = vld [vmem:[%s4718_s4 + $0x160] sm:$0xff] }
  0xc8   :  { %733 = vmatmul.mubr.bf16.gmra.mrb[40].mxu0 %v229_v34  ;;  %3129 = vmatprep.subr.bf16.mxu1 %v3489_v16  ;;  %v239_v34 = vunpack.c.h.s8.bf16 %v182_v56  ;;  %v282_v56 = vld [vmem:[#allocation4 + $0x170] sm:$0xff] }
  0xc9   :  { %740 = vmatprep.mubr.bf16.mxu0 %v233_v37  ;;  %2326 = vperm.xlu1 %3154, %v3729_v57   ;;  %v3307_v37 = vmov 1  }
  0xca   :  { %1455 = vmatmul.mubr.bf16.gmra.mrb[56].mxu1 %v314_v44  ;;  %2321 = vperm.xlu0 %3153, %v3734_v10   ;;  %v324_v44 = vunpack.c.h.s8.bf16 %v279_v2 }
  0xcb   :  { %1462 = vmatprep.mubr.bf16.mxu1 %v318_v3  ;;  %3137 = vmatpush3.bf16.msra.mxu1 %v3489_v16  ;;  %v3748_v16 = vld [vmem:[%s4718_s4 + $0x170] sm:$0xff] }
  0xcc   :  { %3130 = vmatprep.subr.bf16.mxu1 %v3508_v26  ;;  %v185_v3 = vld [vmem:[#allocation4 + $0xb0] sm:$0xff] }
  0xcd   :  { %2336 = vperm.xlu1 %3154, %v3743_v18  }
  0xce   :  { %2331 = vperm.xlu0 %3153, %v3748_v16  }
  0xcf   :  { %3138 = vmatpush3.bf16.msra.mxu1 %v3508_v26  ;;  %v320_v26 = vunpack.c.l.s8.bf16 %v278_v31 }
  0xd0   :  { %741 = vmatmul.mubr.bf16.gmra.mrb[44].mxu0 %v232_v62  ;;  %3131 = vmatprep.subr.bf16.mxu1 %v3538_v40  ;;  %v242_v62 = vunpack.c.l.s8.bf16 %v185_v3 }
  0xd1   :  { %748 = vmatprep.mubr.bf16.mxu0 %v236_v13  ;;  %3156 = vset.pattern.permute.xlu1 %v3307_v37  ;;  %v323_v13 = vunpack.c.h.s8.bf16 %v278_v31 }
  0xd2   :  { %1463 = vmatmul.mubr.bf16.gmra.mrb[60].mxu1 %v317_v17  ;;  %3155 = vset.pattern.permute.xlu0 %v3307_v37  ;;  %v330_v17 = vunpack.c.h.s8.bf16 %v282_v56 }
  0xd3   :  { %1470 = vmatprep.mubr.bf16.mxu1 %v321_v19  ;;  %3139 = vmatpush3.bf16.msra.mxu1 %v3538_v40  ;;  %v238_v40 = vunpack.c.h.s8.bf16 %v181_v21 }
  0xd4   :  { %3132 = vmatprep.subr.bf16.mxu1 %v3599_v11  ;;  %2488 = vperm.xlu1 %3156, %v3429_v48   ;;  %v327_v48 = vunpack.c.l.s8.bf16 %v282_v56 }
  0xd5   :  { %2484 = vperm.xlu0 %3155, %v3415_v43   ;;  %v184_v43 = vld [vmem:[#allocation4 + $0xa8] sm:$0xff] }
  0xd7   :  { %3140 = vmatpush3.bf16.msra.mxu1 %v3599_v11  ;;  %v245_v11 = vunpack.c.h.s8.bf16 %v185_v3 }
  0xd8   :  { %749 = vmatmul.mubr.bf16.gmra.mrb[48].mxu0 %v235_v61  ;;  %2492 = vperm.xlu1 %3156, %v3410_v42   ;;  %v281_v42 = vld [vmem:[#allocation4 + $0x168] sm:$0xff] }
  0xd9   :  { %756 = vmatprep.mubr.bf16.mxu0 %v239_v34  ;;  %2496 = vperm.xlu0 %3155, %v3423_v46   ;;  %v241_v46 = vunpack.c.l.s8.bf16 %v184_v43  ;;  %v326_v2 = vunpack.c.l.s8.bf16 %v281_v42  ;;  %v329_v19 = vunpack.c.h.s8.bf16 %v281_v42  ;;  %v3777_v34 = vpop.permute.xlu1 %2111 }
  0xda   :  { %1471 = vmatmul.mubr.bf16.gmra.mrb[64].mxu1 %v320_v26  ;;  %v3779_v26 = vpop.permute.xlu0 %2101 }
  0xdb   :  { %1478 = vmatprep.mubr.bf16.mxu1 %v324_v44 }
  0xdc   :  { %2500 = vperm.xlu1 %3156, %v3445_v55   ;;  %v244_v55 = vunpack.c.h.s8.bf16 %v184_v43 }
  0xdd   :  { %2504 = vperm.xlu0 %3155, %v3437_v53   ;;  %v188_v53 = vld [vmem:[#allocation4 + $0xc8] sm:$0xff] }
  0xde   :  { %v3787_v3 = vpop.permute.xlu0 %2106 }
  0xe0   :  { %757 = vmatmul.mubr.bf16.gmra.mrb[52].mxu0 %v238_v40  ;;  %2508 = vperm.xlu1 %3156, %v3467_v4   ;;  %v285_v4 = vld [vmem:[#allocation4 + $0x188] sm:$0xff] }
  0xe1   :  { %764 = vmatprep.mubr.bf16.mxu0 %v242_v62  ;;  %2512 = vperm.xlu0 %3155, %v3459_v1   ;;  %v248_v1 = vunpack.c.l.s8.bf16 %v188_v53  ;;  %v333_v21 = vunpack.c.l.s8.bf16 %v285_v4  ;;  %v336_v61 = vunpack.c.h.s8.bf16 %v285_v4 }
  0xe2   :  { %1479 = vmatmul.mubr.bf16.gmra.mrb[68].mxu1 %v323_v13  ;;  %v3793_v62 = vpop.permute.xlu0 %2121  ;;  %v291_v13 = vld [vmem:[#allocation4 + $0x1b8] sm:$0xff] }
  0xe3   :  { %1486 = vmatprep.mubr.bf16.mxu1 %v327_v48 }
  0xe4   :  { %2516 = vperm.xlu1 %3156, %v3487_v15   ;;  %v284_v15 = vld [vmem:[#allocation4 + $0x180] sm:$0xff] }
  0xe5   :  { %2520 = vperm.xlu0 %3155, %v3481_v14   ;;  %v187_v14 = vld [vmem:[#allocation4 + $0xc0] sm:$0xff]  ;;  %v332_v31 = vunpack.c.l.s8.bf16 %v284_v15  ;;  %v335_v37 = vunpack.c.h.s8.bf16 %v284_v15 }
  0xe6   :  { %v3801_v42 = vpop.permute.xlu0 %2131 }
  0xe8   :  { %765 = vmatmul.mubr.bf16.gmra.mrb[56].mxu0 %v241_v46  ;;  %2524 = vperm.xlu1 %3156, %v3504_v25   ;;  %v251_v25 = vunpack.c.h.s8.bf16 %v188_v53  ;;  %v193_v46 = vld [vmem:[#allocation4 + $0xf0] sm:$0xff] }
  0xe9   :  { %772 = vmatprep.mubr.bf16.mxu0 %v245_v11  ;;  %2528 = vperm.xlu0 %3155, %v3498_v22   ;;  %v247_v22 = vunpack.c.l.s8.bf16 %v187_v14  ;;  %v262_v53 = vunpack.c.h.s8.bf16 %v193_v46 }
  0xea   :  { %1487 = vmatmul.mubr.bf16.gmra.mrb[72].mxu1 %v326_v2 }
  0xeb   :  { %1494 = vmatprep.mubr.bf16.mxu1 %v330_v17  ;;  %v3807_v17 = vpop.permute.xlu0 %2141 }
  0xec   :  { %2532 = vperm.xlu1 %3156, %v3519_v30   ;;  %v250_v30 = vunpack.c.h.s8.bf16 %v187_v14  ;;  %4721 = vst [vmem:[#allocation15_spill] sm:$0xff] %v3807_v17 }
  0xed   :  { %2536 = vperm.xlu0 %3155, %v3514_v28   ;;  %v191_v28 = vld [vmem:[#allocation4 + $0xe0] sm:$0xff] }
  0xee   :  { %v257_v40 = vunpack.c.h.s8.bf16 %v191_v28 }
  0xef   :  { %v3815_v4 = vpop.permute.xlu0 %2151 }
  0xf0   :  { %773 = vmatmul.mubr.bf16.gmra.mrb[60].mxu0 %v244_v55  ;;  %2540 = vperm.xlu1 %3156, %v3534_v38   ;;  %v288_v38 = vld [vmem:[#allocation4 + $0x1a0] sm:$0xff]  ;;  %v294_v55 = vld [vmem:[#allocation4 + $0x1d0] sm:$0xff]  ;;  %4723 = vst [vmem:[#allocation17_spill] sm:$0xff] %v3815_v4 }
  0xf1   :  { %780 = vmatprep.mubr.bf16.mxu0 %v248_v1  ;;  %2544 = vperm.xlu0 %3155, %v3529_v35   ;;  %v254_v35 = vunpack.c.l.s8.bf16 %v191_v28 }
  0xf2   :  { %1495 = vmatmul.mubr.bf16.gmra.mrb[76].mxu1 %v329_v19  ;;  %v196_v19 = vld [vmem:[#allocation4 + $0x108] sm:$0xff] }
  0xf3   :  { %1502 = vmatprep.mubr.bf16.mxu1 %v333_v21  ;;  %v3821_v21 = vpop.permute.xlu0 %2161  ;;  %v265_v14 = vunpack.c.l.s8.bf16 %v196_v19 }
  0xf4   :  { %2548 = vperm.xlu1 %3156, %v3549_v45   ;;  %v190_v45 = vld [vmem:[#allocation4 + $0xd8] sm:$0xff]  ;;  %4725 = vst [vmem:[#allocation19_spill] sm:$0xff] %v3821_v21 }
  0xf5   :  { %2552 = vperm.xlu0 %3155, %v3544_v41   ;;  %v339_v41 = vunpack.c.l.s8.bf16 %v288_v38  ;;  %v253_v44 = vunpack.c.l.s8.bf16 %v190_v45 }
  0xf8   :  { %781 = vmatmul.mubr.bf16.gmra.mrb[64].mxu0 %v247_v22  ;;  %2556 = vperm.xlu1 %3156, %v3564_v0   ;;  %v3784_v0 = vpop.permute.xlu1 %2116 }
  0xf9   :  { %788 = vmatprep.mubr.bf16.mxu0 %v251_v25  ;;  %2560 = vperm.xlu0 %3155, %v3559_v52   ;;  %v287_v52 = vld [vmem:[#allocation4 + $0x198] sm:$0xff]  ;;  %v3829_v25 = vpop.permute.xlu0 %2171 }
  0xfa   :  { %1503 = vmatmul.mubr.bf16.gmra.mrb[80].mxu1 %v332_v31  ;;  %4727 = vst [vmem:[#allocation21_spill] sm:$0xff] %v3829_v25  ;;  %v297_v31 = vld [vmem:[#allocation4 + $0x1e8] sm:$0xff] }
  0xfb   :  { %1510 = vmatprep.mubr.bf16.mxu1 %v336_v61 }
  0xfc   :  { %2564 = vperm.xlu1 %3156, %v3577_v59   ;;  %v338_v59 = vunpack.c.l.s8.bf16 %v287_v52  ;;  %v3791_v56 = vpop.permute.xlu1 %2126 }
  0xfd   :  { %2568 = vperm.xlu0 %3155, %v3572_v58   ;;  %v342_v58 = vunpack.c.h.s8.bf16 %v288_v38  ;;  %v3839_v38 = vpop.permute.xlu0 %2181 }
  0xfe   :  { %4729 = vst [vmem:[#allocation23_spill] sm:$0xff] %v3839_v38 }
 0x100   :  { %789 = vmatmul.mubr.bf16.gmra.mrb[68].mxu0 %v250_v30  ;;  %2572 = vperm.xlu1 %3156, %v3590_v7   ;;  %v194_v7 = vld [vmem:[#allocation4 + $0xf8] sm:$0xff]  ;;  %v3798_v43 = vpop.permute.xlu1 %2136 }
 0x101   :  { %796 = vmatprep.mubr.bf16.mxu0 %v254_v35  ;;  %2576 = vperm.xlu0 %3155, %v3585_v5   ;;  %v256_v5 = vunpack.c.h.s8.bf16 %v190_v45  ;;  %v260_v48 = vunpack.c.l.s8.bf16 %v194_v7  ;;  %v263_v11 = vunpack.c.h.s8.bf16 %v194_v7  ;;  %v360_v7 = vunpack.c.h.s8.bf16 %v297_v31 }
 0x102   :  { %1511 = vmatmul.mubr.bf16.gmra.mrb[84].mxu1 %v335_v37  ;;  %v277_v37 = vld [vmem:[#allocation4 + $0x148] sm:$0xff] }
 0x103   :  { %1518 = vmatprep.mubr.bf16.mxu1 %v339_v41  ;;  %v296_v41 = vld [vmem:[#allocation4 + $0x1e0] sm:$0xff] }
 0x104   :  { %2580 = vperm.xlu1 %3156, %v3604_v12   ;;  %v341_v12 = vunpack.c.h.s8.bf16 %v287_v52 }
 0x105   :  { %2584 = vperm.xlu0 %3155, %v3597_v9   ;;  %v345_v9 = vunpack.c.l.s8.bf16 %v291_v13 }
 0x108   :  { %797 = vmatmul.mubr.bf16.gmra.mrb[72].mxu0 %v253_v44  ;;  %2588 = vperm.xlu1 %3156, %v3618_v23   ;;  %v259_v23 = vunpack.c.l.s8.bf16 %v193_v46 }
 0x109   :  { %804 = vmatprep.mubr.bf16.mxu0 %v257_v40  ;;  %2592 = vperm.xlu0 %3155, %v3613_v20   ;;  %v290_v20 = vld [vmem:[#allocation4 + $0x1b0] sm:$0xff] }
 0x10a   :  { %1519 = vmatmul.mubr.bf16.gmra.mrb[88].mxu1 %v338_v59  ;;  %v344_v2 = vunpack.c.l.s8.bf16 %v290_v20  ;;  %v356_v59 = vunpack.c.l.s8.bf16 %v296_v41 }
 0x10b   :  { %1526 = vmatprep.mubr.bf16.mxu1 %v342_v58 }
 0x10c   :  { %2596 = vperm.xlu1 %3156, %v3630_v29   ;;  %v3805_v29 = vpop.permute.xlu1 %2146 }
 0x10d   :  { %2600 = vperm.xlu0 %3155, %v3625_v27   ;;  %4720 = vst [vmem:[#allocation14_spill] sm:$0xff] %v3805_v29  ;;  %v348_v27 = vunpack.c.h.s8.bf16 %v291_v13 }
 0x110   :  { %805 = vmatmul.mubr.bf16.gmra.mrb[76].mxu0 %v256_v5  ;;  %2604 = vperm.xlu1 %3156, %v3642_v39   ;;  %v197_v39 = vld [vmem:[#allocation4 + $0x110] sm:$0xff] }
 0x111   :  { %812 = vmatprep.mubr.bf16.mxu0 %v260_v48  ;;  %2608 = vperm.xlu0 %3155, %v3637_v36   ;;  %v3812_v36 = vpop.permute.xlu1 %2156  ;;  %v266_v1 = vunpack.c.l.s8.bf16 %v197_v39  ;;  %v269_v15 = vunpack.c.h.s8.bf16 %v197_v39  ;;  %v319_v48 = vunpack.c.h.s8.bf16 %v277_v37 }
 0x112   :  { %1527 = vmatmul.mubr.bf16.gmra.mrb[92].mxu1 %v341_v12  ;;  %4722 = vst [vmem:[#allocation16_spill] sm:$0xff] %v3812_v36  ;;  %v300_v12 = vld [vmem:[#allocation4 + $0x200] sm:$0xff] }
 0x113   :  { %1534 = vmatprep.mubr.bf16.mxu1 %v345_v9 }
 0x114   :  { %2612 = vperm.xlu1 %3156, %v3654_v50   ;;  %v347_v50 = vunpack.c.h.s8.bf16 %v290_v20  ;;  %v3851_v52 = vpop.permute.xlu0 %2191 }
 0x115   :  { %2616 = vperm.xlu0 %3155, %v3649_v47   ;;  %v351_v47 = vunpack.c.l.s8.bf16 %v294_v55  ;;  %4731 = vst [vmem:[#allocation25_spill] sm:$0xff] %v3851_v52 }
 0x118   :  { %813 = vmatmul.mubr.bf16.gmra.mrb[80].mxu0 %v259_v23  ;;  %2620 = vperm.xlu1 %3156, %v3666_v63   ;;  %v3819_v63 = vpop.permute.xlu1 %2166  ;;  %v3863_v13 = vpop.permute.xlu0 %2201  ;;  %v359_v23 = vunpack.c.h.s8.bf16 %v296_v41 }
 0x119   :  { %820 = vmatprep.mubr.bf16.mxu0 %v263_v11  ;;  %2624 = vperm.xlu0 %3155, %v3661_v60   ;;  %4724 = vst [vmem:[#allocation18_spill] sm:$0xff] %v3819_v63  ;;  %v293_v60 = vld [vmem:[#allocation4 + $0x1c8] sm:$0xff]  ;;  %4733 = vst [vmem:[#allocation27_spill] sm:$0xff] %v3863_v13 }
 0x11a   :  { %1535 = vmatmul.mubr.bf16.gmra.mrb[96].mxu1 %v344_v2  ;;  %v363_v2 = vunpack.c.l.s8.bf16 %v300_v12 }
 0x11b   :  { %1542 = vmatprep.mubr.bf16.mxu1 %v348_v27 }
 0x11c   :  { %2628 = vperm.xlu1 %3156, %v3679_v8   ;;  %v350_v8 = vunpack.c.l.s8.bf16 %v293_v60  ;;  %v3826_v22 = vpop.permute.xlu1 %2176 }
 0x11d   :  { %2632 = vperm.xlu0 %3155, %v3673_v6   ;;  %v354_v6 = vunpack.c.h.s8.bf16 %v294_v55  ;;  %4726 = vst [vmem:[#allocation20_spill] sm:$0xff] %v3826_v22  ;;  %v283_v55 = vld [vmem:[#allocation4 + $0x178] sm:$0xff] }
 0x11e   :  { %v331_v41 = vunpack.c.h.s8.bf16 %v283_v55 }
 0x120   :  { %821 = vmatmul.mubr.bf16.gmra.mrb[84].mxu0 %v262_v53  ;;  %2636 = vperm.xlu1 %3156, %v3693_v24   ;;  %v274_v24 = vld [vmem:[#allocation4 + $0x130] sm:$0xff]  ;;  %v3835_v28 = vpop.permute.xlu1 %2186  ;;  %v3875_v53 = vpop.permute.xlu0 %2211 }
 0x121   :  { %828 = vmatprep.mubr.bf16.mxu0 %v266_v1  ;;  %2640 = vperm.xlu0 %3155, %v3687_v54   ;;  %v268_v54 = vunpack.c.h.s8.bf16 %v196_v19  ;;  %4728 = vst [vmem:[#allocation22_spill] sm:$0xff] %v3835_v28  ;;  %4735 = vst [vmem:[#allocation29_spill] sm:$0xff] %v3875_v53  ;;  %v299_v1 = vld [vmem:[#allocation4 + $0x1f8] sm:$0xff]  ;;  %v328_v19 = vunpack.c.l.s8.bf16 %v283_v55  ;;  %v289_v55 = vld [vmem:[#allocation4 + $0x1a8] sm:$0xff] }
 0x122   :  { %1543 = vmatmul.mubr.bf16.gmra.mrb[100].mxu1 %v347_v50 }
 0x123   :  { %1550 = vmatprep.mubr.bf16.mxu1 %v351_v47 }
 0x124   :  { %2644 = vperm.xlu1 %3156, %v3707_v33   ;;  %v310_v33 = vunpack.c.l.s8.bf16 %v274_v24  ;;  %v3848_v45 = vpop.permute.xlu1 %2196 }
 0x125   :  { %2648 = vperm.xlu0 %3155, %v3701_v32   ;;  %v353_v32 = vunpack.c.h.s8.bf16 %v293_v60  ;;  %4730 = vst [vmem:[#allocation24_spill] sm:$0xff] %v3848_v45 }
 0x128   :  { %829 = vmatmul.mubr.bf16.gmra.mrb[88].mxu0 %v265_v14  ;;  %2652 = vperm.xlu1 %3156, %v3721_v51   ;;  %v357_v51 = vunpack.c.l.s8.bf16 %v297_v31  ;;  %v286_v31 = vld [vmem:[#allocation4 + $0x190] sm:$0xff] }
 0x129   :  { %836 = vmatprep.mubr.bf16.mxu0 %v269_v15  ;;  %2656 = vperm.xlu0 %3155, %v3715_v49   ;;  %v362_v15 = vunpack.c.l.s8.bf16 %v299_v1 }
 0x12a   :  { %1551 = vmatmul.mubr.bf16.gmra.mrb[104].mxu1 %v350_v8  ;;  %v3883_v8 = vpop.permute.xlu0 %2221 }
 0x12b   :  { %1558 = vmatprep.mubr.bf16.mxu1 %v354_v6  ;;  %4737 = vst [vmem:[#allocation31_spill] sm:$0xff] %v3883_v8 }
 0x12c   :  { %2660 = vperm.xlu1 %3156, %v3734_v10   ;;  %v313_v10 = vunpack.c.h.s8.bf16 %v274_v24  ;;  %v366_v24 = vunpack.c.h.s8.bf16 %v300_v12 }
 0x12d   :  { %v3833_v61 = vpop.f32.mrb[0].mxu1  ;;  %2664 = vperm.xlu0 %3155, %v3729_v57   ;;  %v316_v57 = vunpack.c.l.s8.bf16 %v277_v37 }
 0x12e   :  { %v3837_v30 = vpop.f32.mrb[1].mxu1 }
 0x12f   :  { %v3842_v35 = vpop.f32.mrb[2].mxu1 }
 0x130   :  { %v3845_v49 = vpop.f32.mrb[3].mxu1  ;;  %837 = vmatmul.mubr.bf16.gmra.mrb[92].mxu0 %v268_v54  ;;  %2668 = vperm.xlu1 %3156, %v3748_v16   ;;  %v3861_v16 = vpop.permute.xlu1 %2206 }
 0x131   :  { %3077 = vmatprep.mubr.bf16.mxu0 %v310_v33  ;;  %2672 = vperm.xlu0 %3155, %v3743_v18   ;;  %4732 = vst [vmem:[#allocation26_spill] sm:$0xff] %v3861_v16  ;;  %v280_v18 = vld [vmem:[#allocation4 + $0x160] sm:$0xff] }
 0x132   :  { %1559 = vmatmul.mubr.bf16.gmra.mrb[108].mxu1 %v353_v32  ;;  %v322_v46 = vunpack.c.l.s8.bf16 %v280_v18  ;;  %v325_v50 = vunpack.c.h.s8.bf16 %v280_v18  ;;  %v334_v18 = vunpack.c.l.s8.bf16 %v286_v31 }
 0x133   :  { %1566 = vmatprep.mubr.bf16.mxu1 %v357_v51 }
 0x134   :  { %v3871_v27 = vpop.permute.xlu1 %2216 }
 0x135   :  { %v3853_v44 = vpop.f32.mrb[4].mxu1  ;;  %4734 = vst [vmem:[#allocation28_spill] sm:$0xff] %v3871_v27 }
 0x136   :  { %v3855_v40 = vpop.f32.mrb[5].mxu1 }
 0x137   :  { %v3857_v58 = vpop.f32.mrb[6].mxu1 }
 0x138   :  { %v3859_v5 = vpop.f32.mrb[7].mxu1  ;;  %3078 = vmatmul.mubr.bf16.vlgmr.msra.gmra.mrb[96].mxu0 %v313_v10  ;;  %v3879_v60 = vpop.permute.xlu1 %2226  ;;  %v303_v10 = vld [vmem:[#allocation4 + $0x218] sm:$0xff] }
 0x139   :  { %3081 = vmatprep.mubr.bf16.mxu0 %v316_v57  ;;  %4736 = vst [vmem:[#allocation30_spill] sm:$0xff] %v3879_v60  ;;  %v3894_v57 = vpop.permute.xlu0 %2231 }
 0x13a   :  { %1567 = vmatmul.mubr.bf16.gmra.mrb[112].mxu1 %v356_v59  ;;  %4739 = vst [vmem:[#allocation33_spill] sm:$0xff] %v3894_v57 }
 0x13b   :  { %1574 = vmatprep.mubr.bf16.mxu1 %v360_v7 }
 0x13c   :  { %v3889_v32 = vpop.permute.xlu1 %2236 }
 0x13d   :  { %v3865_v9 = vpop.f32.mrb[8].mxu1  ;;  %4738 = vst [vmem:[#allocation32_spill] sm:$0xff] %v3889_v32  ;;  %v340_v32 = vunpack.c.l.s8.bf16 %v289_v55 }
 0x13e   :  { %v3867_v20 = vpop.f32.mrb[9].mxu1 }
 0x13f   :  { %v3869_v11 = vpop.f32.mrb[10].mxu1 }
 0x140   :  { %v3873_v39 = vpop.f32.mrb[11].mxu1  ;;  %3082 = vmatmul.mubr.bf16.gmra.mrb[100].mxu0 %v319_v48 }
 0x141   :  { %3085 = vmatprep.mubr.bf16.mxu0 %v322_v46 }
 0x142   :  { %1575 = vmatmul.mubr.bf16.gmra.mrb[116].mxu1 %v359_v23  ;;  %v365_v23 = vunpack.c.h.s8.bf16 %v299_v1  ;;  %v3912_v1 = vpop.permute.xlu0 %2241 }
 0x143   :  { %1582 = vmatprep.mubr.bf16.mxu1 %v363_v2  ;;  %4741 = vst [vmem:[#allocation35_spill] sm:$0xff] %v3912_v1  ;;  %v343_v1 = vunpack.c.h.s8.bf16 %v289_v55  ;;  %v295_v55 = vld [vmem:[#allocation4 + $0x1d8] sm:$0xff] }
 0x144   :  { %v352_v45 = vunpack.c.l.s8.bf16 %v295_v55 }
 0x145   :  { %v3877_v47 = vpop.f32.mrb[12].mxu1 }
 0x146   :  { %v3881_v14 = vpop.f32.mrb[13].mxu1  ;;  %v3930_v60 = vpop.permute.xlu0 %2251 }
 0x147   :  { %v3885_v6 = vpop.f32.mrb[14].mxu1  ;;  %4743 = vst [vmem:[#allocation37_spill] sm:$0xff] %v3930_v60  ;;  %v305_v60 = vld [vmem:[#allocation4 + $0x228] sm:$0xff] }
 0x148   :  { %v3887_v54 = vpop.f32.mrb[15].mxu1  ;;  %3086 = vmatmul.mubr.bf16.gmra.mrb[104].mxu0 %v325_v50 }
 0x149   :  { %3089 = vmatprep.mubr.bf16.mxu0 %v328_v19 }
 0x14a   :  { %1583 = vmatmul.mubr.bf16.gmra.mrb[120].mxu1 %v362_v15  ;;  %v302_v15 = vld [vmem:[#allocation4 + $0x210] sm:$0xff] }
 0x14b   :  { %v654_v33 = vpop.f32.mrb[0].mxu0  ;;  %1590 = vmatprep.mubr.bf16.mxu1 %v366_v24  ;;  %v3907_v24 = vpop.permute.xlu1 %2246 }
 0x14c   :  { %v3892_v51 = vadd.f32 %v3837_v30, %v654_v33  ;;  %v656_v37 = vpop.f32.mrb[1].mxu0  ;;  %v369_v30 = vunpack.c.l.s8.bf16 %v303_v10  ;;  %4740 = vst [vmem:[#allocation34_spill] sm:$0xff] %v3907_v24  ;;  %v372_v24 = vunpack.c.h.s8.bf16 %v303_v10 }
 0x14d   :  { %v3896_v59 = vpop.f32.mrb[16].mxu1  ;;  %v657_v7 = vpop.f32.mrb[2].mxu0  ;;  %v337_v37 = vunpack.c.h.s8.bf16 %v286_v31  ;;  %v292_v31 = vld [vmem:[#allocation4 + $0x1c0] sm:$0xff] }
 0x14e   :  { %v3899_v48 = vadd.f32 %v3845_v49, %v657_v7  ;;  %v3901_v12 = vpop.f32.mrb[17].mxu1  ;;  %v659_v46 = vpop.f32.mrb[3].mxu0  ;;  %v346_v27 = vunpack.c.l.s8.bf16 %v292_v31 }
 0x14f   :  { %v3903_v2 = vpop.f32.mrb[18].mxu1 }
 0x150   :  { %v3905_v50 = vpop.f32.mrb[19].mxu1  ;;  %3090 = vmatmul.mubr.bf16.gmra.mrb[108].mxu0 %v331_v41 }
 0x151   :  { %3093 = vmatprep.mubr.bf16.mxu0 %v334_v18 }
 0x152   :  { %1591 = vmatmul.mubr.bf16.gmra.mrb[124].mxu1 %v365_v23 }
 0x153   :  { %v662_v19 = vpop.f32.mrb[4].mxu0  ;;  %1598 = vmatprep.mubr.bf16.mxu1 %v369_v30  ;;  %v368_v30 = vunpack.c.l.s8.bf16 %v302_v15 }
 0x154   :  { %v3910_v49 = vadd.f32 %v3833_v61, %v662_v19  ;;  %v664_v33 = vpop.f32.mrb[5].mxu0 }
 0x155   :  { %v3914_v7 = vpop.f32.mrb[20].mxu1  ;;  %v665_v46 = vpop.f32.mrb[6].mxu0 }
 0x156   :  { %v3917_v41 = vadd.f32 %v3842_v35, %v665_v46  ;;  %v3919_v18 = vpop.f32.mrb[21].mxu1  ;;  %v667_v23 = vpop.f32.mrb[7].mxu0 }
 0x157   :  { %v3921_v57 = vpop.f32.mrb[22].mxu1  ;;  %v3925_v33 = vpop.permute.xlu1 %2256  ;;  %v306_v23 = vld [vmem:[#allocation4 + $0x230] sm:$0xff] }
 0x158   :  { %v3923_v61 = vpop.f32.mrb[23].mxu1  ;;  %3094 = vmatmul.mubr.bf16.gmra.mrb[112].mxu0 %v337_v37  ;;  %4742 = vst [vmem:[#allocation36_spill] sm:$0xff] %v3925_v33 }
 0x159   :  { %3097 = vmatprep.mubr.bf16.mxu0 %v340_v32 }
 0x15a   :  { %1599 = vmatmul.mubr.bf16.gmra.mrb[128].mxu1 %v368_v30  ;;  %v371_v30 = vunpack.c.h.s8.bf16 %v302_v15  ;;  %v3948_v15 = vpop.permute.xlu0 %2261 }
 0x15b   :  { %v670_v19 = vpop.f32.mrb[8].mxu0  ;;  %1606 = vmatprep.mubr.bf16.mxu1 %v372_v24  ;;  %v3943_v53 = vpop.permute.xlu1 %2266  ;;  %4745 = vst [vmem:[#allocation39_spill] sm:$0xff] %v3948_v15  ;;  %v355_v15 = vunpack.c.h.s8.bf16 %v295_v55  ;;  %v301_v55 = vld [vmem:[#allocation4 + $0x208] sm:$0xff] }
 0x15c   :  { %v3928_v35 = vadd.f32 %v3855_v40, %v670_v19  ;;  %v672_v46 = vpop.f32.mrb[9].mxu0  ;;  %v375_v40 = vunpack.c.l.s8.bf16 %v306_v23  ;;  %4744 = vst [vmem:[#allocation38_spill] sm:$0xff] %v3943_v53  ;;  %v378_v53 = vunpack.c.h.s8.bf16 %v306_v23  ;;  %v364_v29 = vunpack.c.l.s8.bf16 %v301_v55 }
 0x15d   :  { %v3932_v8 = vpop.f32.mrb[24].mxu1  ;;  %v673_v10 = vpop.f32.mrb[10].mxu0 }
 0x15e   :  { %v3935_v32 = vadd.f32 %v3859_v5, %v673_v10  ;;  %v3937_v37 = vpop.f32.mrb[25].mxu1  ;;  %v675_v24 = vpop.f32.mrb[11].mxu0 }
 0x15f   :  { %v3939_v33 = vpop.f32.mrb[26].mxu1  ;;  %v349_v24 = vunpack.c.h.s8.bf16 %v292_v31  ;;  %v298_v31 = vld [vmem:[#allocation4 + $0x1f0] sm:$0xff]  ;;  %v3966_v38 = vpop.permute.xlu0 %2271 }
 0x160   :  { %v3941_v19 = vpop.f32.mrb[27].mxu1  ;;  %3098 = vmatmul.mubr.bf16.gmra.mrb[116].mxu0 %v343_v1  ;;  %4748 = vst [vmem:[#allocation42_spill] sm:$0xff] %v3966_v38  ;;  %v358_v63 = vunpack.c.l.s8.bf16 %v298_v31  ;;  %v361_v22 = vunpack.c.h.s8.bf16 %v298_v31 }
 0x161   :  { %3101 = vmatprep.mubr.bf16.mxu0 %v346_v27 }
 0x162   :  { %1607 = vmatmul.mubr.bf16.gmra.mrb[132].mxu1 %v371_v30 }
 0x163   :  { %v678_v46 = vpop.f32.mrb[12].mxu0  ;;  %1614 = vmatprep.mubr.bf16.mxu1 %v375_v40  ;;  %v374_v40 = vunpack.c.l.s8.bf16 %v305_v60 }
 0x164   :  { %v3946_v5 = vadd.f32 %v3853_v44, %v678_v46  ;;  %v680_v10 = vpop.f32.mrb[13].mxu0 }
 0x165   :  { %v3950_v16 = vpop.f32.mrb[28].mxu1  ;;  %v681_v13 = vpop.f32.mrb[14].mxu0 }
 0x166   :  { %v3953_v27 = vadd.f32 %v3857_v58, %v681_v13  ;;  %v3955_v1 = vpop.f32.mrb[29].mxu1  ;;  %v683_v30 = vpop.f32.mrb[15].mxu0 }
 0x167   :  { %v3957_v28 = vpop.f32.mrb[30].mxu1  ;;  %v3961_v10 = vpop.permute.xlu1 %2276  ;;  %v304_v30 = vld [vmem:[#allocation4 + $0x220] sm:$0xff] }
 0x168   :  { %v3959_v44 = vpop.f32.mrb[31].mxu1  ;;  %3102 = vmatmul.mubr.bf16.gmra.mrb[120].mxu0 %v349_v24  ;;  %4746 = vst [vmem:[#allocation40_spill] sm:$0xff] %v3961_v10 }
 0x169   :  { %3105 = vmatprep.mubr.bf16.mxu0 %v352_v45 }
 0x16a   :  { %1615 = vmatmul.mubr.bf16.gmra.mrb[136].mxu1 %v374_v40  ;;  %v377_v40 = vunpack.c.h.s8.bf16 %v305_v60  ;;  %v3984_v60 = vpop.permute.xlu0 %2281 }
 0x16b   :  { %v686_v46 = vpop.f32.mrb[16].mxu0  ;;  %1622 = vmatprep.mubr.bf16.mxu1 %v378_v53  ;;  %v3979_v38 = vpop.permute.xlu1 %2286  ;;  %4752 = vst [vmem:[#allocation46_spill] sm:$0xff] %v3984_v60 }
 0x16c   :  { %v3964_v58 = vadd.f32 %v3867_v20, %v686_v46  ;;  %v688_v13 = vpop.f32.mrb[17].mxu0  ;;  %v370_v20 = vunpack.c.l.s8.bf16 %v304_v30  ;;  %4750 = vst [vmem:[#allocation44_spill] sm:$0xff] %v3979_v38 }
 0x16d   :  { %v3968_v52 = vpop.f32.mrb[32].mxu1  ;;  %v689_v23 = vpop.f32.mrb[18].mxu0 }
 0x16e   :  { %4747 = vst [vmem:[#allocation41_spill] sm:$0xff] %v3964_v58  ;;  %v3971_v45 = vadd.f32 %v3873_v39, %v689_v23  ;;  %v3973_v24 = vpop.f32.mrb[33].mxu1  ;;  %v691_v53 = vpop.f32.mrb[19].mxu0 }
 0x16f   :  { %v3975_v10 = vpop.f32.mrb[34].mxu1  ;;  %v307_v53 = vld [vmem:[#allocation4 + $0x238] sm:$0xff] }
 0x170   :  { %4749 = vst [vmem:[#allocation43_spill] sm:$0xff] %v3971_v45  ;;  %v3977_v46 = vpop.f32.mrb[35].mxu1  ;;  %3106 = vmatmul.mubr.bf16.gmra.mrb[124].mxu0 %v355_v15  ;;  %v4002_v45 = vpop.permute.xlu0 %2291 }
 0x171   :  { %3109 = vmatprep.mubr.bf16.mxu0 %v358_v63  ;;  %4756 = vst [vmem:[#allocation50_spill] sm:$0xff] %v4002_v45 }
 0x172   :  { %1623 = vmatmul.mubr.bf16.gmra.mrb[140].mxu1 %v377_v40 }
 0x173   :  { %v694_v13 = vpop.f32.mrb[20].mxu0  ;;  %3117 = vmatprep.mubr.bf16.mxu1 %v370_v20  ;;  %v373_v20 = vunpack.c.h.s8.bf16 %v304_v30 }
 0x174   :  { %v3982_v39 = vadd.f32 %v3865_v9, %v694_v13  ;;  %v696_v23 = vpop.f32.mrb[21].mxu0  ;;  %v376_v9 = vunpack.c.l.s8.bf16 %v307_v53  ;;  %v4020_v45 = vpop.permute.xlu0 %2301 }
 0x175   :  { %v3986_v21 = vpop.f32.mrb[36].mxu1  ;;  %v697_v25 = vpop.f32.mrb[22].mxu0  ;;  %4760 = vst [vmem:[#allocation54_spill] sm:$0xff] %v4020_v45 }
 0x176   :  { %4751 = vst [vmem:[#allocation45_spill] sm:$0xff] %v3982_v39  ;;  %v3989_v63 = vadd.f32 %v3869_v11, %v697_v25  ;;  %v3991_v15 = vpop.f32.mrb[37].mxu1  ;;  %v699_v40 = vpop.f32.mrb[23].mxu0  ;;  %v367_v11 = vunpack.c.h.s8.bf16 %v301_v55 }
 0x177   :  { %v3993_v38 = vpop.f32.mrb[38].mxu1  ;;  %v3997_v23 = vpop.permute.xlu1 %2296 }
 0x178   :  { %4753 = vst [vmem:[#allocation47_spill] sm:$0xff] %v3989_v63  ;;  %v3995_v13 = vpop.f32.mrb[39].mxu1  ;;  %3110 = vmatmul.mubr.bf16.gmra.mrb[128].mxu0 %v361_v22  ;;  %4754 = vst [vmem:[#allocation48_spill] sm:$0xff] %v3997_v23 }
 0x179   :  { %3113 = vmatprep.mubr.bf16.mxu0 %v364_v29 }
 0x17a   :  { %3118 = vmatmul.mubr.bf16.vlgmr.msra.gmra.mrb[144].mxu1 %v373_v20  ;;  %v379_v20 = vunpack.c.h.s8.bf16 %v307_v53 }
 0x17b   :  { %v702_v31 = vpop.f32.mrb[24].mxu0  ;;  %3121 = vmatprep.mubr.bf16.mxu1 %v376_v9  ;;  %v4015_v55 = vpop.permute.xlu1 %2306 }
 0x17c   :  { %v4000_v60 = vadd.f32 %v3881_v14, %v702_v31  ;;  %v704_v25 = vpop.f32.mrb[25].mxu0  ;;  %4758 = vst [vmem:[#allocation52_spill] sm:$0xff] %v4015_v55 }
 0x17d   :  { %v4004_v30 = vpop.f32.mrb[40].mxu1  ;;  %v705_v40 = vpop.f32.mrb[26].mxu0 }
 0x17e   :  { %4755 = vst [vmem:[#allocation49_spill] sm:$0xff] %v4000_v60  ;;  %v4007_v36 = vadd.f32 %v3887_v54, %v705_v40  ;;  %v4009_v22 = vpop.f32.mrb[41].mxu1  ;;  %v707_v29 = vpop.f32.mrb[27].mxu0 }
 0x17f   :  { %v4011_v9 = vpop.f32.mrb[42].mxu1  ;;  %v4033_v60 = vpop.permute.xlu1 %2316 }
 0x180   :  { %4757 = vst [vmem:[#allocation51_spill] sm:$0xff] %v4007_v36  ;;  %v4013_v23 = vpop.f32.mrb[43].mxu1  ;;  %3114 = vmatmul.mubr.bf16.gmra.mrb[132].mxu0 %v367_v11  ;;  %4762 = vst [vmem:[#allocation56_spill] sm:$0xff] %v4033_v60 }
 0x182   :  { %3122 = vmatmul.mubr.bf16.gmra.mrb[148].mxu1 %v379_v20 }
 0x183   :  { %v710_v14 = vpop.f32.mrb[28].mxu0  ;;  %v4047_v58 = vpop.permute.xlu1 %2326 }
 0x184   :  { %v4018_v31 = vadd.f32 %v3877_v47, %v710_v14  ;;  %v712_v25 = vpop.f32.mrb[29].mxu0  ;;  %4766 = vst [vmem:[#allocation60_spill] sm:$0xff] %v4047_v58 }
 0x185   :  { %v4022_v54 = vpop.f32.mrb[44].mxu1  ;;  %v713_v40 = vpop.f32.mrb[30].mxu0 }
 0x186   :  { %4759 = vst [vmem:[#allocation53_spill] sm:$0xff] %v4018_v31  ;;  %v4025_v53 = vadd.f32 %v3885_v6, %v713_v40  ;;  %v4027_v29 = vpop.f32.mrb[45].mxu1  ;;  %v715_v36 = vpop.f32.mrb[31].mxu0 }
 0x187   :  { %v4029_v11 = vpop.f32.mrb[46].mxu1  ;;  %v4038_v25 = vpop.permute.xlu0 %2311 }
 0x188   :  { %4761 = vst [vmem:[#allocation55_spill] sm:$0xff] %v4025_v53  ;;  %v4031_v20 = vpop.f32.mrb[47].mxu1  ;;  %4764 = vst [vmem:[#allocation58_spill] sm:$0xff] %v4038_v25 }
 0x18b   :  { %v718_v55 = vpop.f32.mrb[32].mxu0 }
 0x18c   :  { %v4036_v47 = vadd.f32 %v3901_v12, %v718_v55  ;;  %v720_v14 = vpop.f32.mrb[33].mxu0 }
 0x18d   :  { %v4040_v45 = vpop.f32.mrb[48].mxu1  ;;  %v721_v6 = vpop.f32.mrb[34].mxu0 }
 0x18e   :  { %4763 = vst [vmem:[#allocation57_spill] sm:$0xff] %v4036_v47  ;;  %v4043_v40 = vadd.f32 %v3905_v50, %v721_v6  ;;  %v1442_v36 = vpop.f32.mrb[49].mxu1  ;;  %v723_v53 = vpop.f32.mrb[35].mxu0 }
 0x18f   :  { %v4045_v31 = vpop.f32.mrb[50].mxu1  ;;  %v4052_v14 = vpop.permute.xlu0 %2321 }
 0x190   :  { %4765 = vst [vmem:[#allocation59_spill] sm:$0xff] %v4043_v40  ;;  %v1445_v63 = vpop.f32.mrb[51].mxu1  ;;  %4768 = vst [vmem:[#allocation62_spill] sm:$0xff] %v4052_v14  ;;  %v4061_v47 = vpop.permute.xlu1 %2336 }
 0x191   :  { %4770 = vst [vmem:[#allocation64_spill] sm:$0xff] %v4061_v47 }
 0x193   :  { %v726_v17 = vpop.f32.mrb[36].mxu0 }
 0x194   :  { %v4050_v12 = vadd.f32 %v3896_v59, %v726_v17  ;;  %v728_v55 = vpop.f32.mrb[37].mxu0 }
 0x195   :  { %v4054_v60 = vpop.f32.mrb[52].mxu1  ;;  %v729_v25 = vpop.f32.mrb[38].mxu0 }
 0x196   :  { %4767 = vst [vmem:[#allocation61_spill] sm:$0xff] %v4050_v12  ;;  %v4057_v50 = vadd.f32 %v3903_v2, %v729_v25  ;;  %v1450_v6 = vpop.f32.mrb[53].mxu1  ;;  %v731_v53 = vpop.f32.mrb[39].mxu0 }
 0x197   :  { %v4059_v36 = vpop.f32.mrb[54].mxu1  ;;  %v4066_v55 = vpop.permute.xlu0 %2331 }
 0x198   :  { %4769 = vst [vmem:[#allocation63_spill] sm:$0xff] %v4057_v50  ;;  %v1453_v63 = vpop.f32.mrb[55].mxu1  ;;  %4772 = vst [vmem:[#allocation66_spill] sm:$0xff] %v4066_v55  ;;  %v4075_v50 = vpop.permute.xlu1 %2488 }
 0x19b   :  { %v734_v40 = vpop.f32.mrb[40].mxu0  ;;  %v4077_v12 = vpop.permute.xlu0 %2484 }
 0x19c   :  { %v4064_v17 = vadd.f32 %v3919_v18, %v734_v40  ;;  %v736_v59 = vpop.f32.mrb[41].mxu0 }
 0x19d   :  { %v4068_v58 = vpop.f32.mrb[56].mxu1  ;;  %v737_v14 = vpop.f32.mrb[42].mxu0 }
 0x19e   :  { %4771 = vst [vmem:[#allocation65_spill] sm:$0xff] %v4064_v17  ;;  %v4071_v2 = vadd.f32 %v3923_v61, %v737_v14  ;;  %v1458_v25 = vpop.f32.mrb[57].mxu1  ;;  %v739_v6 = vpop.f32.mrb[43].mxu0 }
 0x19f   :  { %v4073_v53 = vpop.f32.mrb[58].mxu1  ;;  %v4091_v4 = vpop.permute.xlu0 %2496 }
 0x1a0   :  { %4773 = vst [vmem:[#allocation67_spill] sm:$0xff] %v4071_v2  ;;  %4774 = vst [vmem:[#allocation68_spill] sm:$0xff] %v4073_v53  ;;  %v1461_v63 = vpop.f32.mrb[59].mxu1  ;;  %v4089_v2 = vpop.permute.xlu1 %2492 }
 0x1a3   :  { %v742_v47 = vpop.f32.mrb[44].mxu0  ;;  %v4105_v53 = vpop.permute.xlu0 %2504 }
 0x1a4   :  { %v4080_v18 = vadd.f32 %v3914_v7, %v742_v47  ;;  %v744_v40 = vpop.f32.mrb[45].mxu0 }
 0x1a5   :  { %v4082_v59 = vpop.f32.mrb[60].mxu1  ;;  %v745_v55 = vpop.f32.mrb[46].mxu0 }
 0x1a6   :  { %4775 = vst [vmem:[#allocation69_spill] sm:$0xff] %v4080_v18  ;;  %v4085_v61 = vadd.f32 %v3921_v57, %v745_v55  ;;  %v1466_v14 = vpop.f32.mrb[61].mxu1  ;;  %v747_v25 = vpop.f32.mrb[47].mxu0 }
 0x1a7   :  { %v4087_v6 = vpop.f32.mrb[62].mxu1 }
 0x1a8   :  { %4776 = vst [vmem:[#allocation70_spill] sm:$0xff] %v4085_v61  ;;  %v1469_v63 = vpop.f32.mrb[63].mxu1  ;;  %v4103_v61 = vpop.permute.xlu1 %2500 }
 0x1ab   :  { %v750_v17 = vpop.f32.mrb[48].mxu0 }
 0x1ac   :  { %v4094_v7 = vadd.f32 %v3937_v37, %v750_v17  ;;  %v752_v47 = vpop.f32.mrb[49].mxu0 }
 0x1ad   :  { %v4096_v40 = vpop.f32.mrb[64].mxu1  ;;  %v753_v18 = vpop.f32.mrb[50].mxu0 }
 0x1ae   :  { %4777 = vst [vmem:[#allocation71_spill] sm:$0xff] %v4094_v7  ;;  %4778 = vst [vmem:[#allocation72_spill] sm:$0xff] %v4096_v40  ;;  %v4099_v57 = vadd.f32 %v3941_v19, %v753_v18  ;;  %v1474_v55 = vpop.f32.mrb[65].mxu1  ;;  %v755_v14 = vpop.f32.mrb[51].mxu0 }
 0x1af   :  { %v4101_v25 = vpop.f32.mrb[66].mxu1  ;;  %v4119_v40 = vpop.permute.xlu0 %2512 }
 0x1b0   :  { %4779 = vst [vmem:[#allocation73_spill] sm:$0xff] %v4099_v57  ;;  %4780 = vst [vmem:[#allocation74_spill] sm:$0xff] %v4101_v25  ;;  %v1477_v63 = vpop.f32.mrb[67].mxu1  ;;  %v4117_v57 = vpop.permute.xlu1 %2508 }
 0x1b3   :  { %v758_v39 = vpop.f32.mrb[52].mxu0 }
 0x1b4   :  { %v4108_v37 = vadd.f32 %v3932_v8, %v758_v39  ;;  %v760_v17 = vpop.f32.mrb[53].mxu0 }
 0x1b5   :  { %v4110_v47 = vpop.f32.mrb[68].mxu1  ;;  %v761_v7 = vpop.f32.mrb[54].mxu0 }
 0x1b6   :  { %4781 = vst [vmem:[#allocation75_spill] sm:$0xff] %v4108_v37  ;;  %4782 = vst [vmem:[#allocation76_spill] sm:$0xff] %v4110_v47  ;;  %v4113_v19 = vadd.f32 %v3939_v33, %v761_v7  ;;  %v1482_v18 = vpop.f32.mrb[69].mxu1  ;;  %v763_v55 = vpop.f32.mrb[55].mxu0 }
 0x1b7   :  { %v4115_v14 = vpop.f32.mrb[70].mxu1  ;;  %v4133_v47 = vpop.permute.xlu0 %2520 }
 0x1b8   :  { %4783 = vst [vmem:[#allocation77_spill] sm:$0xff] %v4113_v19  ;;  %4784 = vst [vmem:[#allocation78_spill] sm:$0xff] %v4115_v14  ;;  %v1485_v63 = vpop.f32.mrb[71].mxu1  ;;  %v4131_v19 = vpop.permute.xlu1 %2516 }
 0x1bb   :  { %v766_v25 = vpop.f32.mrb[56].mxu0 }
 0x1bc   :  { %v4122_v8 = vadd.f32 %v3955_v1, %v766_v25  ;;  %v768_v39 = vpop.f32.mrb[57].mxu0 }
 0x1bd   :  { %v4124_v17 = vpop.f32.mrb[72].mxu1  ;;  %v769_v37 = vpop.f32.mrb[58].mxu0 }
 0x1be   :  { %4785 = vst [vmem:[#allocation79_spill] sm:$0xff] %v4122_v8  ;;  %4786 = vst [vmem:[#allocation80_spill] sm:$0xff] %v4124_v17  ;;  %v4127_v33 = vadd.f32 %v3959_v44, %v769_v37  ;;  %v1490_v7 = vpop.f32.mrb[73].mxu1  ;;  %v771_v18 = vpop.f32.mrb[59].mxu0 }
 0x1bf   :  { %v4129_v55 = vpop.f32.mrb[74].mxu1  ;;  %v4147_v17 = vpop.permute.xlu0 %2528 }
 0x1c0   :  { %4787 = vst [vmem:[#allocation81_spill] sm:$0xff] %v4127_v33  ;;  %4788 = vst [vmem:[#allocation82_spill] sm:$0xff] %v4129_v55  ;;  %v1493_v63 = vpop.f32.mrb[75].mxu1  ;;  %v4145_v33 = vpop.permute.xlu1 %2524 }
 0x1c3   :  { %v774_v14 = vpop.f32.mrb[60].mxu0 }
 0x1c4   :  { %v4136_v1 = vadd.f32 %v3950_v16, %v774_v14  ;;  %v776_v25 = vpop.f32.mrb[61].mxu0 }
 0x1c5   :  { %v4138_v39 = vpop.f32.mrb[76].mxu1  ;;  %v777_v8 = vpop.f32.mrb[62].mxu0 }
 0x1c6   :  { %4789 = vst [vmem:[#allocation83_spill] sm:$0xff] %v4136_v1  ;;  %4790 = vst [vmem:[#allocation84_spill] sm:$0xff] %v4138_v39  ;;  %v4141_v44 = vadd.f32 %v3957_v28, %v777_v8  ;;  %v1498_v37 = vpop.f32.mrb[77].mxu1  ;;  %v779_v7 = vpop.f32.mrb[63].mxu0 }
 0x1c7   :  { %v4143_v18 = vpop.f32.mrb[78].mxu1  ;;  %v4161_v39 = vpop.permute.xlu0 %2536 }
 0x1c8   :  { %4791 = vst [vmem:[#allocation85_spill] sm:$0xff] %v4141_v44  ;;  %4792 = vst [vmem:[#allocation86_spill] sm:$0xff] %v4143_v18  ;;  %v1501_v63 = vpop.f32.mrb[79].mxu1  ;;  %v4159_v44 = vpop.permute.xlu1 %2532 }
 0x1cb   :  { %v782_v55 = vpop.f32.mrb[64].mxu0 }
 0x1cc   :  { %v4150_v16 = vadd.f32 %v3973_v24, %v782_v55  ;;  %v784_v14 = vpop.f32.mrb[65].mxu0 }
 0x1cd   :  { %v4152_v25 = vpop.f32.mrb[80].mxu1  ;;  %v785_v1 = vpop.f32.mrb[66].mxu0 }
 0x1ce   :  { %4793 = vst [vmem:[#allocation87_spill] sm:$0xff] %v4150_v16  ;;  %4794 = vst [vmem:[#allocation88_spill] sm:$0xff] %v4152_v25  ;;  %v4155_v28 = vadd.f32 %v3977_v46, %v785_v1  ;;  %v1506_v8 = vpop.f32.mrb[81].mxu1  ;;  %v787_v37 = vpop.f32.mrb[67].mxu0 }
 0x1cf   :  { %v4157_v7 = vpop.f32.mrb[82].mxu1  ;;  %v4175_v25 = vpop.permute.xlu0 %2544 }
 0x1d0   :  { %4795 = vst [vmem:[#allocation89_spill] sm:$0xff] %v4155_v28  ;;  %4796 = vst [vmem:[#allocation90_spill] sm:$0xff] %v4157_v7  ;;  %v1509_v63 = vpop.f32.mrb[83].mxu1  ;;  %v4173_v28 = vpop.permute.xlu1 %2540 }
 0x1d3   :  { %v790_v18 = vpop.f32.mrb[68].mxu0 }
 0x1d4   :  { %v4164_v24 = vadd.f32 %v3968_v52, %v790_v18  ;;  %v792_v55 = vpop.f32.mrb[69].mxu0 }
 0x1d5   :  { %v4166_v14 = vpop.f32.mrb[84].mxu1  ;;  %v793_v16 = vpop.f32.mrb[70].mxu0 }
 0x1d6   :  { %4797 = vst [vmem:[#allocation91_spill] sm:$0xff] %v4164_v24  ;;  %4798 = vst [vmem:[#allocation92_spill] sm:$0xff] %v4166_v14  ;;  %v4169_v46 = vadd.f32 %v3975_v10, %v793_v16  ;;  %v1514_v1 = vpop.f32.mrb[85].mxu1  ;;  %v795_v8 = vpop.f32.mrb[71].mxu0 }
 0x1d7   :  { %v4171_v37 = vpop.f32.mrb[86].mxu1  ;;  %v4189_v14 = vpop.permute.xlu0 %2552 }
 0x1d8   :  { %4799 = vst [vmem:[#allocation93_spill] sm:$0xff] %v4169_v46  ;;  %4800 = vst [vmem:[#allocation94_spill] sm:$0xff] %v4171_v37  ;;  %v1517_v63 = vpop.f32.mrb[87].mxu1  ;;  %v4187_v46 = vpop.permute.xlu1 %2548 }
 0x1db   :  { %v798_v7 = vpop.f32.mrb[72].mxu0 }
 0x1dc   :  { %v4178_v52 = vadd.f32 %v3991_v15, %v798_v7  ;;  %v800_v18 = vpop.f32.mrb[73].mxu0 }
 0x1dd   :  { %v4180_v55 = vpop.f32.mrb[88].mxu1  ;;  %v801_v24 = vpop.f32.mrb[74].mxu0 }
 0x1de   :  { %4801 = vst [vmem:[#allocation95_spill] sm:$0xff] %v4178_v52  ;;  %4802 = vst [vmem:[#allocation96_spill] sm:$0xff] %v4180_v55  ;;  %v4183_v10 = vadd.f32 %v3995_v13, %v801_v24  ;;  %v1522_v16 = vpop.f32.mrb[89].mxu1  ;;  %v803_v1 = vpop.f32.mrb[75].mxu0 }
 0x1df   :  { %v4185_v8 = vpop.f32.mrb[90].mxu1  ;;  %v4203_v55 = vpop.permute.xlu0 %2560 }
 0x1e0   :  { %4803 = vst [vmem:[#allocation97_spill] sm:$0xff] %v4183_v10  ;;  %4804 = vst [vmem:[#allocation98_spill] sm:$0xff] %v4185_v8  ;;  %v1525_v63 = vpop.f32.mrb[91].mxu1  ;;  %v4201_v10 = vpop.permute.xlu1 %2556 }
 0x1e3   :  { %v806_v37 = vpop.f32.mrb[76].mxu0 }
 0x1e4   :  { %v4192_v15 = vadd.f32 %v3986_v21, %v806_v37  ;;  %v808_v7 = vpop.f32.mrb[77].mxu0 }
 0x1e5   :  { %v4194_v18 = vpop.f32.mrb[92].mxu1  ;;  %v809_v52 = vpop.f32.mrb[78].mxu0 }
 0x1e6   :  { %4805 = vst [vmem:[#allocation99_spill] sm:$0xff] %v4192_v15  ;;  %4806 = vst [vmem:[#allocation100_spill] sm:$0xff] %v4194_v18  ;;  %v4197_v13 = vadd.f32 %v3993_v38, %v809_v52  ;;  %v1530_v24 = vpop.f32.mrb[93].mxu1  ;;  %v811_v16 = vpop.f32.mrb[79].mxu0 }
 0x1e7   :  { %v4199_v1 = vpop.f32.mrb[94].mxu1  ;;  %v4217_v18 = vpop.permute.xlu0 %2568 }
 0x1e8   :  { %4807 = vst [vmem:[#allocation101_spill] sm:$0xff] %v4197_v13  ;;  %4808 = vst [vmem:[#allocation102_spill] sm:$0xff] %v4199_v1  ;;  %v1533_v63 = vpop.f32.mrb[95].mxu1  ;;  %v4215_v13 = vpop.permute.xlu1 %2564 }
 0x1eb   :  { %v814_v8 = vpop.f32.mrb[80].mxu0 }
 0x1ec   :  { %v4206_v21 = vadd.f32 %v4009_v22, %v814_v8  ;;  %v816_v37 = vpop.f32.mrb[81].mxu0 }
 0x1ed   :  { %v4208_v7 = vpop.f32.mrb[96].mxu1  ;;  %v817_v15 = vpop.f32.mrb[82].mxu0 }
 0x1ee   :  { %4809 = vst [vmem:[#allocation103_spill] sm:$0xff] %v4206_v21  ;;  %4810 = vst [vmem:[#allocation104_spill] sm:$0xff] %v4208_v7  ;;  %v4211_v38 = vadd.f32 %v4013_v23, %v817_v15  ;;  %v1538_v52 = vpop.f32.mrb[97].mxu1  ;;  %v819_v24 = vpop.f32.mrb[83].mxu0 }
 0x1ef   :  { %v4213_v16 = vpop.f32.mrb[98].mxu1  ;;  %v4231_v7 = vpop.permute.xlu0 %2576 }
 0x1f0   :  { %4811 = vst [vmem:[#allocation105_spill] sm:$0xff] %v4211_v38  ;;  %4812 = vst [vmem:[#allocation106_spill] sm:$0xff] %v4213_v16  ;;  %v1541_v63 = vpop.f32.mrb[99].mxu1  ;;  %v4229_v38 = vpop.permute.xlu1 %2572 }
 0x1f3   :  { %v822_v1 = vpop.f32.mrb[84].mxu0 }
 0x1f4   :  { %v4220_v22 = vadd.f32 %v4004_v30, %v822_v1  ;;  %v824_v8 = vpop.f32.mrb[85].mxu0 }
 0x1f5   :  { %v4222_v37 = vpop.f32.mrb[100].mxu1  ;;  %v825_v21 = vpop.f32.mrb[86].mxu0 }
 0x1f6   :  { %4813 = vst [vmem:[#allocation107_spill] sm:$0xff] %v4220_v22  ;;  %4814 = vst [vmem:[#allocation108_spill] sm:$0xff] %v4222_v37  ;;  %v4225_v23 = vadd.f32 %v4011_v9, %v825_v21  ;;  %v1546_v15 = vpop.f32.mrb[101].mxu1  ;;  %v827_v52 = vpop.f32.mrb[87].mxu0 }
 0x1f7   :  { %v4227_v24 = vpop.f32.mrb[102].mxu1  ;;  %v4245_v37 = vpop.permute.xlu0 %2584 }
 0x1f8   :  { %4815 = vst [vmem:[#allocation109_spill] sm:$0xff] %v4225_v23  ;;  %4816 = vst [vmem:[#allocation110_spill] sm:$0xff] %v4227_v24  ;;  %v1549_v63 = vpop.f32.mrb[103].mxu1  ;;  %v4243_v23 = vpop.permute.xlu1 %2580 }
 0x1f9   :  { %4821 = vst [vmem:[#allocation115_spill] sm:$0xff] %v4245_v37 }
 0x1fb   :  { %v830_v16 = vpop.f32.mrb[88].mxu0 }
 0x1fc   :  { %v4234_v30 = vadd.f32 %v4027_v29, %v830_v16  ;;  %v832_v1 = vpop.f32.mrb[89].mxu0 }
 0x1fd   :  { %v4236_v8 = vpop.f32.mrb[104].mxu1  ;;  %v833_v22 = vpop.f32.mrb[90].mxu0 }
 0x1fe   :  { %4817 = vst [vmem:[#allocation111_spill] sm:$0xff] %v4234_v30  ;;  %4818 = vst [vmem:[#allocation112_spill] sm:$0xff] %v4236_v8  ;;  %v4239_v9 = vadd.f32 %v4031_v20, %v833_v22  ;;  %v1554_v21 = vpop.f32.mrb[105].mxu1  ;;  %v835_v15 = vpop.f32.mrb[91].mxu0 }
 0x1ff   :  { %v4241_v52 = vpop.f32.mrb[106].mxu1 }
 0x200   :  { %4819 = vst [vmem:[#allocation113_spill] sm:$0xff] %v4239_v9  ;;  %4820 = vst [vmem:[#allocation114_spill] sm:$0xff] %v4241_v52  ;;  %v1557_v63 = vpop.f32.mrb[107].mxu1  ;;  %v2341_v9 = vmul.f32 %v3777_v34, %v3910_v49  ;;  %v2339_v52 = vmul.f32 %v3779_v26, %v3892_v51  ;;  %v2340_v26 = vmul.f32 %v3787_v3, %v3899_v48  ;;  %v2006_v51 = vld [vmem:[%s4717_s3 + $0x18] sm:$0xff] }
 0x203   :  { %v838_v24 = vpop.f32.mrb[92].mxu0 }
 0x204   :  { %v4248_v29 = vadd.f32 %v4022_v54, %v838_v24  ;;  %v840_v16 = vpop.f32.mrb[93].mxu0  ;;  %v2005_v54 = vld [vmem:[%s4717_s3 + $0x10] sm:$0xff]  ;;  %v4264_v24 = vpop.permute.xlu1 %2588 }
 0x205   :  { %v4250_v1 = vpop.f32.mrb[108].mxu1  ;;  %v841_v30 = vpop.f32.mrb[94].mxu0 }
 0x206   :  { %4822 = vst [vmem:[#allocation116_spill] sm:$0xff] %v4248_v29  ;;  %4823 = vst [vmem:[#allocation117_spill] sm:$0xff] %v4250_v1  ;;  %v4253_v20 = vadd.f32 %v4029_v11, %v841_v30  ;;  %v1562_v22 = vpop.f32.mrb[109].mxu1  ;;  %v843_v21 = vpop.f32.mrb[95].mxu0  ;;  %v2003_v11 = vld [vmem:[%s4717_s3] sm:$0xff]  ;;  %v2342_v30 = vmul.f32 %v3784_v0, %v3917_v41  ;;  %v2004_v0 = vld [vmem:[%s4717_s3 + $0x8] sm:$0xff]  ;;  %v2389_v41 = vadd.f32 %v2341_v9, %v2005_v54 }
 0x207   :  { %v4255_v15 = vpop.f32.mrb[110].mxu1  ;;  %v4271_v22 = vpop.permute.xlu0 %2592  ;;  %v2387_v48 = vadd.f32 %v2339_v52, %v2003_v11  ;;  %v2010_v11 = vld [vmem:[%s4717_s3 + $0x38] sm:$0xff] }
 0x208   :  { %4824 = vst [vmem:[#allocation118_spill] sm:$0xff] %v4253_v20  ;;  %4825 = vst [vmem:[#allocation119_spill] sm:$0xff] %v4255_v15  ;;  %v1565_v63 = vpop.f32.mrb[111].mxu1  ;;  %v4300_v54 = vpop.permute.xlu1 %2596 }
 0x209   :  { %4826 = vst [vmem:[#allocation120_spill] sm:$0xff] %v4271_v22  ;;  %v2388_v22 = vadd.f32 %v2340_v26, %v2004_v0 }
 0x20b   :  { %v3079_v16 = vpop.f32.mrb[96].mxu0 }
 0x20c   :  { %v1674_v34 = vadd.f32 %v3079_v16, %v4054_v60  ;;  %v1665_v49 = vpop.f32.mrb[97].mxu0 }
 0x20d   :  { %v4279_v21 = vpop.f32.mrb[112].mxu1  ;;  %v1666_v63 = vadd.f32 %v1665_v49, %v4040_v45  ;;  %v3080_v20 = vpop.f32.mrb[98].mxu0  ;;  %v2390_v45 = vadd.f32 %v2342_v30, %v2006_v51 }
 0x20e   :  { %4827 = vst [vmem:[#allocation121_spill] sm:$0xff] %v4279_v21  ;;  %v2677_v60 = vmul.f32 %v4089_v2, %v1674_v34  ;;  %v1570_v16 = vpop.f32.mrb[113].mxu1  ;;  %v1677_v29 = vadd.f32 %v3080_v20, %v4059_v36  ;;  %v1668_v3 = vpop.f32.mrb[99].mxu0  ;;  %v2345_v36 = vmul.f32 %v3801_v42, %v3946_v5  ;;  %v2346_v42 = vmul.f32 %v3798_v43, %v3953_v27  ;;  %v2008_v34 = vld [vmem:[%s4717_s3 + $0x28] sm:$0xff] }
 0x20f   :  { %v2675_v15 = vmul.f32 %v4077_v12, %v1666_v63  ;;  %v4288_v8 = vpop.f32.mrb[114].mxu1  ;;  %v1669_v21 = vadd.f32 %v1668_v3, %v4045_v31  ;;  %v2343_v12 = vmul.f32 %v3793_v62, %v3928_v35  ;;  %v2009_v31 = vld [vmem:[%s4717_s3 + $0x30] sm:$0xff]  ;;  %v4307_v5 = vpop.permute.xlu0 %2600 }
 0x210   :  { %v2725_v49 = vadd.f32 %v2677_v60, %v2389_v41  ;;  %v2678_v1 = vmul.f32 %v4091_v4, %v1677_v29  ;;  %v1573_v37 = vpop.f32.mrb[115].mxu1  ;;  %v2394_v60 = vadd.f32 %v2346_v42, %v2010_v11  ;;  %v4834_v42 = vld [vmem:[#allocation16_spill] sm:$0xff] }
 0x211   :  { %v2723_v9 = vadd.f32 %v2675_v15, %v2387_v48  ;;  %v2676_v2 = vmul.f32 %v4075_v50, %v1669_v21  ;;  %v2007_v50 = vld [vmem:[%s4717_s3 + $0x20] sm:$0xff]  ;;  %v2344_v15 = vmul.f32 %v3791_v56, %v3935_v32 }
 0x212   :  { %v2773_v20 = vmax.f32 %v2725_v49, 0.0  ;;  %v2726_v52 = vadd.f32 %v2678_v1, %v2390_v45  ;;  %v2391_v21 = vadd.f32 %v2343_v12, %v2007_v50  ;;  %v4833_v50 = vld [vmem:[#allocation47_spill] sm:$0xff] }
 0x213   :  { %v2771_v4 = vmax.f32 %v2723_v9, 0.0  ;;  %v2724_v37 = vadd.f32 %v2676_v2, %v2388_v22  ;;  %v3083_v29 = vpop.f32.mrb[100].mxu0  ;;  %v2392_v45 = vadd.f32 %v2344_v15, %v2008_v34  ;;  %v4829_v9 = vld [vmem:[#allocation45_spill] sm:$0xff]  ;;  %v4835_v15 = vld [vmem:[#allocation76_spill] sm:$0xff] }
 0x214   :  { %2821 = vst [vmem:[#allocation10 + $0x10] sm:$0xff] %v2773_v20  ;;  %v2774_v62 = vmax.f32 %v2726_v52, 0.0  ;;  %v1690_v35 = vadd.f32 %v3083_v29, %v4082_v59  ;;  %v1681_v1 = vpop.f32.mrb[101].mxu0  ;;  %v2393_v59 = vadd.f32 %v2345_v36, %v2009_v31  ;;  %v4831_v52 = vld [vmem:[#allocation41_spill] sm:$0xff]  ;;  %v2013_v31 = vld [vmem:[%s4717_s3 + $0x50] sm:$0xff] }
 0x215   :  { %2819 = vst [vmem:[#allocation10] sm:$0xff] %v2771_v4  ;;  %v2772_v30 = vmax.f32 %v2724_v37, 0.0  ;;  %v4315_v22 = vpop.f32.mrb[116].mxu1  ;;  %v1682_v43 = vadd.f32 %v1681_v1, %v4068_v58  ;;  %v3084_v27 = vpop.f32.mrb[102].mxu0  ;;  %v4828_v58 = vld [vmem:[#allocation68_spill] sm:$0xff] }
 0x216   :  { %2822 = vst [vmem:[#allocation10 + $0x18] sm:$0xff] %v2774_v62  ;;  %v2681_v26 = vmul.f32 %v4117_v57, %v1690_v35  ;;  %v1578_v56 = vpop.f32.mrb[117].mxu1  ;;  %v1693_v32 = vadd.f32 %v3084_v27, %v4087_v6  ;;  %v1684_v51 = vpop.f32.mrb[103].mxu0  ;;  %v4830_v6 = vld [vmem:[#allocation17_spill] sm:$0xff]  ;;  %v2350_v62 = vmul.f32 %v4834_v42, %v4833_v50  ;;  %v4837_v27 = vld [vmem:[#allocation14_spill] sm:$0xff] }
 0x217   :  { %2820 = vst [vmem:[#allocation10 + $0x8] sm:$0xff] %v2772_v30  ;;  %v2679_v63 = vmul.f32 %v4103_v61, %v1682_v43  ;;  %v4324_v0 = vpop.f32.mrb[118].mxu1  ;;  %v1685_v41 = vadd.f32 %v1684_v51, %v4828_v58  ;;  %v2349_v2 = vmul.f32 %v4830_v6, %v4829_v9  ;;  %v4832_v61 = vld [vmem:[#allocation15_spill] sm:$0xff]  ;;  %v4336_v4 = vpop.permute.xlu1 %2604  ;;  %v4840_v9 = vld [vmem:[#allocation74_spill] sm:$0xff]  ;;  %v4843_v50 = vld [vmem:[#allocation49_spill] sm:$0xff] }
 0x218   :  { %v2729_v16 = vadd.f32 %v2681_v26, %v2393_v59  ;;  %v2682_v3 = vmul.f32 %v4119_v40, %v1693_v32  ;;  %v1581_v48 = vpop.f32.mrb[119].mxu1  ;;  %v2347_v12 = vmul.f32 %v4832_v61, %v4831_v52  ;;  %v4343_v35 = vpop.permute.xlu0 %2608  ;;  %v4836_v43 = vld [vmem:[#allocation43_spill] sm:$0xff]  ;;  %v2014_v59 = vld [vmem:[%s4717_s3 + $0x58] sm:$0xff]  ;;  %v4838_v32 = vld [vmem:[#allocation72_spill] sm:$0xff] }
 0x219   :  { %v2727_v49 = vadd.f32 %v2679_v63, %v2391_v21  ;;  %v2680_v57 = vmul.f32 %v4105_v53, %v1685_v41  ;;  %v2011_v53 = vld [vmem:[%s4717_s3 + $0x40] sm:$0xff]  ;;  %v2348_v34 = vmul.f32 %v4837_v27, %v4836_v43  ;;  %v2012_v63 = vld [vmem:[%s4717_s3 + $0x48] sm:$0xff]  ;;  %v2397_v58 = vadd.f32 %v2349_v2, %v2013_v31  ;;  %v4846_v43 = vld [vmem:[#allocation20_spill] sm:$0xff] }
 0x21a   :  { %v2777_v36 = vmax.f32 %v2729_v16, 0.0  ;;  %v2730_v20 = vadd.f32 %v2682_v3, %v2394_v60  ;;  %v4839_v16 = vld [vmem:[#allocation78_spill] sm:$0xff] }
 0x21b   :  { %v2775_v40 = vmax.f32 %v2727_v49, 0.0  ;;  %v2728_v37 = vadd.f32 %v2680_v57, %v2392_v45  ;;  %v3087_v29 = vpop.f32.mrb[104].mxu0  ;;  %v2395_v45 = vadd.f32 %v2347_v12, %v2011_v53  ;;  %v2396_v61 = vadd.f32 %v2348_v34, %v2012_v63  ;;  %v4849_v63 = vld [vmem:[#allocation18_spill] sm:$0xff] }
 0x21c   :  { %2825 = vst [vmem:[#allocation10 + $0x30] sm:$0xff] %v2777_v36  ;;  %v2778_v1 = vmax.f32 %v2730_v20, 0.0  ;;  %v1706_v11 = vadd.f32 %v3087_v29, %v4835_v15  ;;  %v1697_v30 = vpop.f32.mrb[105].mxu0  ;;  %v2398_v36 = vadd.f32 %v2350_v62, %v2014_v59  ;;  %v2017_v62 = vld [vmem:[%s4717_s3 + $0x70] sm:$0xff]  ;;  %v4379_v34 = vpop.permute.xlu0 %2616 }
 0x21d   :  { %2823 = vst [vmem:[#allocation10 + $0x20] sm:$0xff] %v2775_v40  ;;  %v2776_v26 = vmax.f32 %v2728_v37, 0.0  ;;  %v4351_v56 = vpop.f32.mrb[120].mxu1  ;;  %v1698_v51 = vadd.f32 %v1697_v30, %v4838_v32  ;;  %v3088_v21 = vpop.f32.mrb[106].mxu0  ;;  %v4841_v40 = vld [vmem:[#allocation53_spill] sm:$0xff]  ;;  %v4845_v30 = vld [vmem:[#allocation55_spill] sm:$0xff] }
 0x21e   :  { %2826 = vst [vmem:[#allocation10 + $0x38] sm:$0xff] %v2778_v1  ;;  %v2685_v41 = vmul.f32 %v4145_v33, %v1706_v11  ;;  %v1586_v60 = vpop.f32.mrb[121].mxu1  ;;  %v1709_v3 = vadd.f32 %v3088_v21, %v4839_v16  ;;  %v1700_v48 = vpop.f32.mrb[107].mxu0  ;;  %v4842_v37 = vld [vmem:[#allocation21_spill] sm:$0xff]  ;;  %v2354_v27 = vmul.f32 %v4846_v43, %v4845_v30  ;;  %v4848_v21 = vld [vmem:[#allocation51_spill] sm:$0xff] }
 0x21f   :  { %2824 = vst [vmem:[#allocation10 + $0x28] sm:$0xff] %v2776_v26  ;;  %v2683_v49 = vmul.f32 %v4131_v19, %v1698_v51  ;;  %v4360_v57 = vpop.f32.mrb[122].mxu1  ;;  %v1701_v6 = vadd.f32 %v1700_v48, %v4840_v9  ;;  %v2353_v29 = vmul.f32 %v4842_v37, %v4841_v40  ;;  %v4844_v19 = vld [vmem:[#allocation19_spill] sm:$0xff]  ;;  %v4372_v1 = vpop.permute.xlu1 %2612  ;;  %v4847_v26 = vld [vmem:[#allocation84_spill] sm:$0xff]  ;;  %v4852_v40 = vld [vmem:[#allocation82_spill] sm:$0xff] }
 0x220   :  { %v2733_v20 = vadd.f32 %v2685_v41, %v2397_v58  ;;  %v2686_v52 = vmul.f32 %v4147_v17, %v1709_v3  ;;  %v1589_v2 = vpop.f32.mrb[123].mxu1  ;;  %v2351_v42 = vmul.f32 %v4844_v19, %v4843_v50  ;;  %v2352_v58 = vmul.f32 %v4849_v63, %v4848_v21  ;;  %v2018_v41 = vld [vmem:[%s4717_s3 + $0x78] sm:$0xff]  ;;  %v4850_v3 = vld [vmem:[#allocation80_spill] sm:$0xff]  ;;  %v4858_v21 = vld [vmem:[#allocation22_spill] sm:$0xff] }
 0x221   :  { %v2731_v31 = vadd.f32 %v2683_v49, %v2395_v45  ;;  %v2684_v33 = vmul.f32 %v4133_v47, %v1701_v6  ;;  %v2015_v47 = vld [vmem:[%s4717_s3 + $0x60] sm:$0xff]  ;;  %v2016_v49 = vld [vmem:[%s4717_s3 + $0x68] sm:$0xff]  ;;  %v2401_v9 = vadd.f32 %v2353_v29, %v2017_v62  ;;  %v4855_v30 = vld [vmem:[#allocation57_spill] sm:$0xff] }
 0x222   :  { %v2781_v12 = vmax.f32 %v2733_v20, 0.0  ;;  %v2734_v53 = vadd.f32 %v2686_v52, %v2398_v36  ;;  %v4851_v20 = vld [vmem:[#allocation86_spill] sm:$0xff]  ;;  %v2400_v19 = vadd.f32 %v2352_v58, %v2016_v49  ;;  %v4859_v58 = vld [vmem:[#allocation63_spill] sm:$0xff] }
 0x223   :  { %v2779_v17 = vmax.f32 %v2731_v31, 0.0  ;;  %v2732_v15 = vadd.f32 %v2684_v33, %v2396_v61  ;;  %v3091_v11 = vpop.f32.mrb[108].mxu0  ;;  %v2399_v61 = vadd.f32 %v2351_v42, %v2015_v47 }
 0x224   :  { %2829 = vst [vmem:[#allocation10 + $0x50] sm:$0xff] %v2781_v12  ;;  %v2782_v59 = vmax.f32 %v2734_v53, 0.0  ;;  %v1722_v32 = vadd.f32 %v3091_v11, %v4847_v26  ;;  %v1713_v51 = vpop.f32.mrb[109].mxu0  ;;  %v2402_v12 = vadd.f32 %v2354_v27, %v2018_v41  ;;  %v2021_v27 = vld [vmem:[%s4717_s3 + $0x90] sm:$0xff] }
 0x225   :  { %2827 = vst [vmem:[#allocation10 + $0x40] sm:$0xff] %v2779_v17  ;;  %v2780_v60 = vmax.f32 %v2732_v15, 0.0  ;;  %v4387_v16 = vpop.f32.mrb[124].mxu1  ;;  %v1714_v48 = vadd.f32 %v1713_v51, %v4850_v3  ;;  %v3092_v45 = vpop.f32.mrb[110].mxu0  ;;  %v4853_v17 = vld [vmem:[#allocation61_spill] sm:$0xff]  ;;  %v4857_v51 = vld [vmem:[#allocation59_spill] sm:$0xff] }
 0x226   :  { %2830 = vst [vmem:[#allocation10 + $0x58] sm:$0xff] %v2782_v59  ;;  %v2689_v6 = vmul.f32 %v4173_v28, %v1722_v32  ;;  %v1594_v36 = vpop.f32.mrb[125].mxu1  ;;  %v1725_v52 = vadd.f32 %v3092_v45, %v4851_v20  ;;  %v1716_v2 = vpop.f32.mrb[111].mxu0  ;;  %v4854_v15 = vld [vmem:[#allocation25_spill] sm:$0xff]  ;;  %v2356_v63 = vmul.f32 %v4858_v21, %v4857_v51  ;;  %v4860_v41 = vld [vmem:[#allocation24_spill] sm:$0xff]  ;;  %v2024_v21 = vld [vmem:[%s4717_s3 + $0xa8] sm:$0xff] }
 0x227   :  { %2828 = vst [vmem:[#allocation10 + $0x48] sm:$0xff] %v2780_v60  ;;  %v2687_v31 = vmul.f32 %v4159_v44, %v1714_v48  ;;  %v4396_v33 = vpop.f32.mrb[126].mxu1  ;;  %v1717_v37 = vadd.f32 %v1716_v2, %v4852_v40  ;;  %v2357_v11 = vmul.f32 %v4854_v15, %v4853_v17  ;;  %v4856_v44 = vld [vmem:[#allocation23_spill] sm:$0xff]  ;;  %v4408_v59 = vpop.permute.xlu1 %2620  ;;  %v2358_v60 = vmul.f32 %v4860_v41, %v4859_v58  ;;  %v4861_v45 = vld [vmem:[#allocation92_spill] sm:$0xff]  ;;  %v2022_v36 = vld [vmem:[%s4717_s3 + $0x98] sm:$0xff] }
 0x228   :  { %v2737_v53 = vadd.f32 %v2689_v6, %v2401_v9  ;;  %v2690_v50 = vmul.f32 %v4175_v25, %v1725_v52  ;;  %v1597_v29 = vpop.f32.mrb[127].mxu1  ;;  %v2355_v43 = vmul.f32 %v4856_v44, %v4855_v30  ;;  %v4417_v3 = vpop.permute.xlu0 %2624  ;;  %v2020_v6 = vld [vmem:[%s4717_s3 + $0x88] sm:$0xff]  ;;  %v4862_v2 = vld [vmem:[#allocation88_spill] sm:$0xff]  ;;  %v4864_v17 = vld [vmem:[#allocation90_spill] sm:$0xff] }
 0x229   :  { %v2735_v62 = vadd.f32 %v2687_v31, %v2399_v61  ;;  %v2688_v28 = vmul.f32 %v4161_v39, %v1717_v37  ;;  %v2019_v39 = vld [vmem:[%s4717_s3 + $0x80] sm:$0xff]  ;;  %v2405_v40 = vadd.f32 %v2357_v11, %v2021_v27  ;;  %v4865_v27 = vld [vmem:[#allocation65_spill] sm:$0xff] }
 0x22a   :  { %v2785_v42 = vmax.f32 %v2737_v53, 0.0  ;;  %v2738_v47 = vadd.f32 %v2690_v50, %v2402_v12  ;;  %v4863_v53 = vld [vmem:[#allocation94_spill] sm:$0xff] }
 0x22b   :  { %v2783_v25 = vmax.f32 %v2735_v62, 0.0  ;;  %v2736_v26 = vadd.f32 %v2688_v28, %v2400_v19  ;;  %v3095_v32 = vpop.f32.mrb[112].mxu0  ;;  %v2403_v19 = vadd.f32 %v2355_v43, %v2019_v39 }
 0x22c   :  { %2833 = vst [vmem:[#allocation10 + $0x70] sm:$0xff] %v2785_v42  ;;  %v2786_v48 = vmax.f32 %v2738_v47, 0.0  ;;  %v1738_v49 = vadd.f32 %v3095_v32, %v4861_v45  ;;  %v1729_v9 = vpop.f32.mrb[113].mxu0  ;;  %v2404_v42 = vadd.f32 %v2356_v63, %v2020_v6  ;;  %v2406_v47 = vadd.f32 %v2358_v60, %v2022_v36  ;;  %v4868_v32 = vld [vmem:[#allocation26_spill] sm:$0xff]  ;;  %v4869_v63 = vld [vmem:[#allocation69_spill] sm:$0xff] }
 0x22d   :  { %2831 = vst [vmem:[#allocation10 + $0x60] sm:$0xff] %v2783_v25  ;;  %v2784_v20 = vmax.f32 %v2736_v26, 0.0  ;;  %v4426_v52 = vpop.f32.mrb[128].mxu1  ;;  %v1730_v61 = vadd.f32 %v1729_v9, %v4862_v2  ;;  %v3096_v31 = vpop.f32.mrb[114].mxu0  ;;  %v4867_v26 = vld [vmem:[#allocation67_spill] sm:$0xff]  ;;  %v4871_v45 = vld [vmem:[#allocation70_spill] sm:$0xff] }
 0x22e   :  { %2834 = vst [vmem:[#allocation10 + $0x78] sm:$0xff] %v2786_v48  ;;  %v2693_v37 = vmul.f32 %v4201_v10, %v1738_v49  ;;  %v1602_v12 = vpop.f32.mrb[129].mxu1  ;;  %v1741_v50 = vadd.f32 %v3096_v31, %v4863_v53  ;;  %v1732_v29 = vpop.f32.mrb[115].mxu0  ;;  %v4866_v10 = vld [vmem:[#allocation27_spill] sm:$0xff]  ;;  %v2360_v51 = vmul.f32 %v4868_v32, %v4867_v26  ;;  %v2025_v48 = vld [vmem:[%s4717_s3 + $0xb0] sm:$0xff]  ;;  %v2026_v2 = vld [vmem:[%s4717_s3 + $0xb8] sm:$0xff] }
 0x22f   :  { %2832 = vst [vmem:[#allocation10 + $0x68] sm:$0xff] %v2784_v20  ;;  %v2691_v62 = vmul.f32 %v4187_v46, %v1730_v61  ;;  %v4432_v28 = vpop.f32.mrb[130].mxu1  ;;  %v1733_v15 = vadd.f32 %v1732_v29, %v4864_v17  ;;  %v2359_v25 = vmul.f32 %v4866_v10, %v4865_v27  ;;  %v2023_v46 = vld [vmem:[%s4717_s3 + $0xa0] sm:$0xff]  ;;  %v4872_v49 = vld [vmem:[#allocation28_spill] sm:$0xff]  ;;  %v4454_v9 = vpop.permute.xlu1 %2628 }
 0x230   :  { %v2741_v30 = vadd.f32 %v2693_v37, %v2405_v40  ;;  %v2694_v11 = vmul.f32 %v4203_v55, %v1741_v50  ;;  %v1605_v44 = vpop.f32.mrb[131].mxu1  ;;  %v4870_v55 = vld [vmem:[#allocation29_spill] sm:$0xff]  ;;  %v4459_v61 = vpop.permute.xlu0 %2632  ;;  %v4873_v40 = vld [vmem:[#allocation100_spill] sm:$0xff]  ;;  %v2408_v50 = vadd.f32 %v2360_v51, %v2024_v21  ;;  %v4877_v10 = vld [vmem:[#allocation102_spill] sm:$0xff] }
 0x231   :  { %v2739_v43 = vadd.f32 %v2691_v62, %v2403_v19  ;;  %v2692_v39 = vmul.f32 %v4189_v14, %v1733_v15  ;;  %v2361_v58 = vmul.f32 %v4870_v55, %v4869_v63  ;;  %v2362_v14 = vmul.f32 %v4872_v49, %v4871_v45  ;;  %v4874_v62 = vld [vmem:[#allocation96_spill] sm:$0xff]  ;;  %v2027_v51 = vld [vmem:[%s4717_s3 + $0xc0] sm:$0xff]  ;;  %v4883_v45 = vld [vmem:[#allocation77_spill] sm:$0xff] }
 0x232   :  { %v2789_v41 = vmax.f32 %v2741_v30, 0.0  ;;  %v2742_v60 = vadd.f32 %v2694_v11, %v2406_v47  ;;  %v2407_v53 = vadd.f32 %v2359_v25, %v2023_v46  ;;  %v4875_v47 = vld [vmem:[#allocation71_spill] sm:$0xff]  ;;  %v4880_v55 = vld [vmem:[#allocation98_spill] sm:$0xff]  ;;  %v4884_v49 = vld [vmem:[#allocation32_spill] sm:$0xff] }
 0x233   :  { %v2787_v6 = vmax.f32 %v2739_v43, 0.0  ;;  %v2740_v36 = vadd.f32 %v2692_v39, %v2404_v42  ;;  %v3099_v20 = vpop.f32.mrb[116].mxu0  ;;  %v2409_v42 = vadd.f32 %v2361_v58, %v2025_v48  ;;  %v4876_v30 = vld [vmem:[#allocation31_spill] sm:$0xff]  ;;  %v2410_v25 = vadd.f32 %v2362_v14, %v2026_v2  ;;  %v4878_v43 = vld [vmem:[#allocation73_spill] sm:$0xff]  ;;  %v4879_v39 = vld [vmem:[#allocation30_spill] sm:$0xff] }
 0x234   :  { %2837 = vst [vmem:[#allocation10 + $0x90] sm:$0xff] %v2789_v41  ;;  %v2790_v31 = vmax.f32 %v2742_v60, 0.0  ;;  %v1754_v37 = vadd.f32 %v3099_v20, %v4873_v40  ;;  %v1745_v12 = vpop.f32.mrb[117].mxu0  ;;  %v2363_v11 = vmul.f32 %v4876_v30, %v4875_v47  ;;  %v2364_v46 = vmul.f32 %v4879_v39, %v4878_v43  ;;  %v4881_v41 = vld [vmem:[#allocation75_spill] sm:$0xff]  ;;  %v4882_v60 = vld [vmem:[#allocation33_spill] sm:$0xff]  ;;  %v4510_v43 = vpop.permute.xlu1 %2636 }
 0x235   :  { %2835 = vst [vmem:[#allocation10 + $0x80] sm:$0xff] %v2787_v6  ;;  %v2788_v29 = vmax.f32 %v2740_v36, 0.0  ;;  %v4462_v19 = vpop.f32.mrb[132].mxu1  ;;  %v1746_v17 = vadd.f32 %v1745_v12, %v4874_v62  ;;  %v3100_v15 = vpop.f32.mrb[118].mxu0  ;;  %v2365_v48 = vmul.f32 %v4882_v60, %v4881_v41  ;;  %v2366_v14 = vmul.f32 %v4884_v49, %v4883_v45  ;;  %v2030_v2 = vld [vmem:[%s4717_s3 + $0xd8] sm:$0xff]  ;;  %v4886_v40 = vld [vmem:[#allocation35_spill] sm:$0xff] }
 0x236   :  { %2838 = vst [vmem:[#allocation10 + $0x98] sm:$0xff] %v2790_v31  ;;  %v2697_v44 = vmul.f32 %v4229_v38, %v1754_v37  ;;  %v1610_v27 = vpop.f32.mrb[133].mxu1  ;;  %v1757_v26 = vadd.f32 %v3100_v15, %v4877_v10  ;;  %v1748_v32 = vpop.f32.mrb[119].mxu0  ;;  %v2028_v38 = vld [vmem:[%s4717_s3 + $0xc8] sm:$0xff]  ;;  %v4887_v12 = vld [vmem:[#allocation81_spill] sm:$0xff] }
 0x237   :  { %2836 = vst [vmem:[#allocation10 + $0x88] sm:$0xff] %v2788_v29  ;;  %v2695_v21 = vmul.f32 %v4215_v13, %v1746_v17  ;;  %v4475_v63 = vpop.f32.mrb[134].mxu1  ;;  %v1749_v58 = vadd.f32 %v1748_v32, %v4880_v55  ;;  %v2029_v13 = vld [vmem:[%s4717_s3 + $0xd0] sm:$0xff]  ;;  %v4885_v31 = vld [vmem:[#allocation79_spill] sm:$0xff]  ;;  %v4888_v29 = vld [vmem:[#allocation34_spill] sm:$0xff]  ;;  %v2412_v32 = vadd.f32 %v2364_v46, %v2028_v38  ;;  %v2414_v41 = vadd.f32 %v2366_v14, %v2030_v2 }
 0x238   :  { %v2745_v6 = vadd.f32 %v2697_v44, %v2409_v42  ;;  %v2698_v36 = vmul.f32 %v4231_v7, %v1757_v26  ;;  %v1613_v20 = vpop.f32.mrb[135].mxu1  ;;  %v2367_v37 = vmul.f32 %v4886_v40, %v4885_v31  ;;  %v2368_v62 = vmul.f32 %v4888_v29, %v4887_v12  ;;  %v2031_v7 = vld [vmem:[%s4717_s3 + $0xe0] sm:$0xff]  ;;  %v2032_v47 = vld [vmem:[%s4717_s3 + $0xe8] sm:$0xff]  ;;  %v4890_v44 = vld [vmem:[#allocation37_spill] sm:$0xff] }
 0x239   :  { %v2743_v17 = vadd.f32 %v2695_v21, %v2407_v53  ;;  %v2696_v15 = vmul.f32 %v4217_v18, %v1749_v58  ;;  %v2411_v42 = vadd.f32 %v2363_v11, %v2027_v51  ;;  %v4889_v30 = vld [vmem:[#allocation83_spill] sm:$0xff]  ;;  %v2033_v53 = vld [vmem:[%s4717_s3 + $0xf0] sm:$0xff]  ;;  %v4891_v18 = vld [vmem:[#allocation85_spill] sm:$0xff]  ;;  %v2413_v58 = vadd.f32 %v2365_v48, %v2029_v13 }
 0x23a   :  { %v2369_v27 = vmul.f32 %v4890_v44, %v4889_v30  ;;  %v2793_v10 = vmax.f32 %v2745_v6, 0.0  ;;  %v2746_v26 = vadd.f32 %v2698_v36, %v2410_v25  ;;  %v4892_v11 = vld [vmem:[#allocation36_spill] sm:$0xff]  ;;  %v2034_v60 = vld [vmem:[%s4717_s3 + $0xf8] sm:$0xff]  ;;  %v4515_v25 = vpop.permute.xlu0 %2640  ;;  %v4518_v6 = vadd.f32 %v2367_v37, %v2031_v7  ;;  %v4895_v31 = vld [vmem:[#allocation87_spill] sm:$0xff] }
 0x23b   :  { %v2370_v51 = vmul.f32 %v4892_v11, %v4891_v18  ;;  %v2791_v39 = vmax.f32 %v2743_v17, 0.0  ;;  %v2744_v21 = vadd.f32 %v2696_v15, %v2408_v50  ;;  %v3103_v55 = vpop.f32.mrb[120].mxu0  ;;  %v4893_v38 = vld [vmem:[#allocation108_spill] sm:$0xff]  ;;  %v4520_v36 = vadd.f32 %v2368_v62, %v2032_v47  ;;  %v4896_v40 = vld [vmem:[#allocation39_spill] sm:$0xff]  ;;  %v4897_v37 = vld [vmem:[#allocation110_spill] sm:$0xff] }
 0x23c   :  { %2841 = vst [vmem:[#allocation10 + $0xb0] sm:$0xff] %v2793_v10  ;;  %v2794_v46 = vmax.f32 %v2746_v26, 0.0  ;;  %v1770_v45 = vadd.f32 %v3103_v55, %v4893_v38  ;;  %v1761_v49 = vpop.f32.mrb[121].mxu0  ;;  %v4894_v48 = vld [vmem:[#allocation104_spill] sm:$0xff]  ;;  %v4525_v2 = vadd.f32 %v2369_v27, %v2033_v53  ;;  %v2371_v12 = vmul.f32 %v4896_v40, %v4895_v31  ;;  %v2035_v47 = vld [vmem:[%s4717_s3 + $0x100] sm:$0xff]  ;;  %v4898_v30 = vld [vmem:[#allocation89_spill] sm:$0xff] }
 0x23d   :  { %2839 = vst [vmem:[#allocation10 + $0xa0] sm:$0xff] %v2791_v39  ;;  %v2792_v50 = vmax.f32 %v2744_v21, 0.0  ;;  %v4522_v20 = vpop.f32.mrb[136].mxu1  ;;  %v1762_v14 = vadd.f32 %v1761_v49, %v4894_v48  ;;  %v3104_v13 = vpop.f32.mrb[122].mxu0  ;;  %v4531_v7 = vadd.f32 %v2370_v51, %v2034_v60  ;;  %v4899_v44 = vld [vmem:[#allocation38_spill] sm:$0xff]  ;;  %v2036_v18 = vld [vmem:[%s4717_s3 + $0x108] sm:$0xff] }
 0x23e   :  { %2842 = vst [vmem:[#allocation10 + $0xb8] sm:$0xff] %v2794_v46  ;;  %v2701_v29 = vmul.f32 %v4264_v24, %v1770_v45  ;;  %v1618_v17 = vpop.f32.mrb[137].mxu1  ;;  %v1773_v15 = vadd.f32 %v3104_v13, %v4897_v37  ;;  %v1764_v62 = vpop.f32.mrb[123].mxu0  ;;  %v2372_v27 = vmul.f32 %v4899_v44, %v4898_v30  ;;  %v4900_v53 = vld [vmem:[#allocation106_spill] sm:$0xff]  ;;  %v4901_v11 = vld [vmem:[#allocation91_spill] sm:$0xff]  ;;  %v4903_v21 = vld [vmem:[#allocation93_spill] sm:$0xff] }
 0x23f   :  { %2840 = vst [vmem:[#allocation10 + $0xa8] sm:$0xff] %v2792_v50  ;;  %v2699_v10 = vmul.f32 %v4243_v23, %v1762_v14  ;;  %v4539_v26 = vpop.f32.mrb[138].mxu1  ;;  %v1765_v24 = vadd.f32 %v1764_v62, %v4900_v53  ;;  %v4902_v51 = vld [vmem:[#allocation42_spill] sm:$0xff]  ;;  %v4904_v55 = vld [vmem:[#allocation40_spill] sm:$0xff]  ;;  %v2038_v50 = vld [vmem:[%s4717_s3 + $0x118] sm:$0xff] }
 0x240   :  { %v2373_v39 = vmul.f32 %v4902_v51, %v4901_v11  ;;  %v2374_v60 = vmul.f32 %v4904_v55, %v4903_v21  ;;  %v2749_v46 = vadd.f32 %v2701_v29, %v2413_v58  ;;  %v4905_v38 = vld [vmem:[#allocation120_spill] sm:$0xff]  ;;  %v1621_v49 = vpop.f32.mrb[139].mxu1  ;;  %v4906_v48 = vld [vmem:[#allocation95_spill] sm:$0xff]  ;;  %v4907_v14 = vld [vmem:[#allocation46_spill] sm:$0xff]  ;;  %v4561_v29 = vadd.f32 %v2371_v12, %v2035_v47 }
 0x241   :  { %v2702_v45 = vmul.f32 %v4905_v38, %v1773_v15  ;;  %v2037_v23 = vld [vmem:[%s4717_s3 + $0x110] sm:$0xff]  ;;  %v2375_v13 = vmul.f32 %v4907_v14, %v4906_v48  ;;  %v4908_v31 = vld [vmem:[#allocation97_spill] sm:$0xff]  ;;  %v2747_v37 = vadd.f32 %v2699_v10, %v2411_v42  ;;  %v4910_v62 = vld [vmem:[#allocation115_spill] sm:$0xff]  ;;  %v4571_v55 = vadd.f32 %v2372_v27, %v2036_v18  ;;  %v4587_v27 = vpop.permute.xlu0 %2648 }
 0x242   :  { %v4909_v40 = vld [vmem:[#allocation44_spill] sm:$0xff]  ;;  %v2700_v58 = vmul.f32 %v4910_v62, %v1765_v24  ;;  %v2039_v15 = vld [vmem:[%s4717_s3 + $0x120] sm:$0xff]  ;;  %v2040_v30 = vld [vmem:[%s4717_s3 + $0x128] sm:$0xff]  ;;  %v2797_v51 = vmax.f32 %v2749_v46, 0.0  ;;  %v4578_v24 = vpop.permute.xlu1 %2644  ;;  %v4580_v14 = vadd.f32 %v2373_v39, %v2037_v23 }
 0x243   :  { %v2376_v17 = vmul.f32 %v4909_v40, %v4908_v31  ;;  %v4911_v44 = vld [vmem:[#allocation99_spill] sm:$0xff]  ;;  %v4912_v53 = vld [vmem:[#allocation50_spill] sm:$0xff]  ;;  %v2750_v21 = vadd.f32 %v2702_v45, %v2414_v41  ;;  %v2041_v42 = vld [vmem:[%s4717_s3 + $0x130] sm:$0xff]  ;;  %v2795_v38 = vmax.f32 %v2747_v37, 0.0  ;;  %v3107_v48 = vpop.f32.mrb[124].mxu0  ;;  %v4582_v31 = vadd.f32 %v2374_v60, %v2038_v50 }
 0x244   :  { %v2377_v11 = vmul.f32 %v4912_v53, %v4911_v44  ;;  %v4913_v12 = vld [vmem:[#allocation101_spill] sm:$0xff]  ;;  %v4914_v47 = vld [vmem:[#allocation48_spill] sm:$0xff]  ;;  %v2748_v49 = vadd.f32 %v2700_v58, %v2412_v32  ;;  %2845 = vst [vmem:[#allocation10 + $0xd0] sm:$0xff] %v2797_v51  ;;  %v1777_v40 = vpop.f32.mrb[125].mxu0  ;;  %v4590_v62 = vadd.f32 %v2375_v13, %v2039_v15  ;;  %v4918_v44 = vld [vmem:[#allocation103_spill] sm:$0xff] }
 0x245   :  { %v2378_v10 = vmul.f32 %v4914_v47, %v4913_v12  ;;  %v2042_v41 = vld [vmem:[%s4717_s3 + $0x138] sm:$0xff]  ;;  %v2798_v18 = vmax.f32 %v2750_v21, 0.0  ;;  %v4592_v37 = vadd.f32 %v2376_v17, %v2040_v30  ;;  %2843 = vst [vmem:[#allocation10 + $0xc0] sm:$0xff] %v2795_v38  ;;  %v4594_v39 = vpop.f32.mrb[140].mxu1  ;;  %v4917_v60 = vld [vmem:[#allocation112_spill] sm:$0xff]  ;;  %v3108_v50 = vpop.f32.mrb[126].mxu0 }
 0x246   :  { %v4915_v46 = vld [vmem:[#allocation117_spill] sm:$0xff]  ;;  %v2796_v32 = vmax.f32 %v2748_v49, 0.0  ;;  %v1778_v23 = vadd.f32 %v1777_v40, %v4917_v60  ;;  %v4597_v58 = vadd.f32 %v2377_v11, %v2041_v42  ;;  %v4919_v53 = vld [vmem:[#allocation54_spill] sm:$0xff]  ;;  %v1626_v12 = vpop.f32.mrb[141].mxu1  ;;  %v4920_v13 = vld [vmem:[#allocation119_spill] sm:$0xff]  ;;  %v1780_v17 = vpop.f32.mrb[127].mxu0 }
 0x247   :  { %v1786_v45 = vadd.f32 %v3107_v48, %v4915_v46  ;;  %4916 = vst [vmem:[#allocation68_spill] sm:$0xff] %v4592_v37  ;;  %v2379_v51 = vmul.f32 %v4919_v53, %v4918_v44  ;;  %2846 = vst [vmem:[#allocation10 + $0xd8] sm:$0xff] %v2798_v18  ;;  %v1789_v15 = vadd.f32 %v3108_v50, %v4920_v13  ;;  %v2043_v47 = vld [vmem:[%s4717_s3 + $0x140] sm:$0xff]  ;;  %v4922_v38 = vld [vmem:[#allocation105_spill] sm:$0xff]  ;;  %v4611_v48 = vpop.f32.mrb[142].mxu1 }
 0x248   :  { %v4603_v30 = vadd.f32 %v2378_v10, %v2042_v41  ;;  %v4923_v49 = vld [vmem:[#allocation52_spill] sm:$0xff]  ;;  %2844 = vst [vmem:[#allocation10 + $0xc8] sm:$0xff] %v2796_v32  ;;  %v2703_v42 = vmul.f32 %v4300_v54, %v1778_v23  ;;  %v4924_v18 = vld [vmem:[#allocation114_spill] sm:$0xff]  ;;  %v2044_v46 = vld [vmem:[%s4717_s3 + $0x148] sm:$0xff]  ;;  %v1629_v53 = vpop.f32.mrb[143].mxu1 }
 0x249   :  { %v2705_v21 = vmul.f32 %v4336_v4, %v1786_v45  ;;  %v2380_v11 = vmul.f32 %v4923_v49, %v4922_v38  ;;  %v1781_v4 = vadd.f32 %v1780_v17, %v4924_v18  ;;  %v4925_v10 = vld [vmem:[#allocation107_spill] sm:$0xff]  ;;  %v4926_v41 = vld [vmem:[#allocation58_spill] sm:$0xff]  ;;  %v4927_v40 = vld [vmem:[#allocation109_spill] sm:$0xff]  ;;  %v2706_v32 = vmul.f32 %v4343_v35, %v1789_v15 }
 0x24a   :  { %4921 = vst [vmem:[#allocation45_spill] sm:$0xff] %v4603_v30  ;;  %v2381_v45 = vmul.f32 %v4926_v41, %v4925_v10  ;;  %v4928_v60 = vld [vmem:[#allocation56_spill] sm:$0xff]  ;;  %v2046_v23 = vld [vmem:[%s4717_s3 + $0x158] sm:$0xff]  ;;  %v4929_v12 = vld [vmem:[#allocation111_spill] sm:$0xff]  ;;  %v2751_v10 = vadd.f32 %v2703_v42, %v4518_v6  ;;  %v2427_v35 = vadd.f32 %v2379_v51, %v2043_v47  ;;  %v2653_v6 = vpop.permute.xlu1 %2652 }
 0x24b   :  { %v2382_v50 = vmul.f32 %v4928_v60, %v4927_v40  ;;  %v2753_v44 = vadd.f32 %v2705_v21, %v4525_v2  ;;  %v2045_v54 = vld [vmem:[%s4717_s3 + $0x150] sm:$0xff]  ;;  %v4930_v13 = vld [vmem:[#allocation62_spill] sm:$0xff]  ;;  %v4931_v38 = vld [vmem:[#allocation113_spill] sm:$0xff]  ;;  %v2704_v2 = vmul.f32 %v4307_v5, %v1781_v4 }
 0x24c   :  { %v2383_v17 = vmul.f32 %v4930_v13, %v4929_v12  ;;  %v4932_v49 = vld [vmem:[#allocation60_spill] sm:$0xff]  ;;  %v2047_v21 = vld [vmem:[%s4717_s3 + $0x160] sm:$0xff]  ;;  %v2048_v15 = vld [vmem:[%s4717_s3 + $0x168] sm:$0xff]  ;;  %v2754_v12 = vadd.f32 %v2706_v32, %v4531_v7  ;;  %v4644_v13 = vadd.f32 %v2380_v11, %v2044_v46  ;;  %v2799_v4 = vmax.f32 %v2751_v10, 0.0 }
 0x24d   :  { %v2384_v18 = vmul.f32 %v4932_v49, %v4931_v38  ;;  %v4933_v41 = vld [vmem:[#allocation116_spill] sm:$0xff]  ;;  %v4934_v40 = vld [vmem:[#allocation66_spill] sm:$0xff]  ;;  %v2801_v53 = vmax.f32 %v2753_v44, 0.0  ;;  %v2752_v38 = vadd.f32 %v2704_v2, %v4520_v36  ;;  %v3111_v49 = vpop.f32.mrb[128].mxu0  ;;  %v2429_v37 = vadd.f32 %v2381_v45, %v2045_v54  ;;  %v2050_v7 = vld [vmem:[%s4717_s3 + $0x178] sm:$0xff]  ;;  %v3119_v45 = vpop.f32.mrb[144].mxu1 }
 0x24e   :  { %v2385_v60 = vmul.f32 %v4934_v40, %v4933_v41  ;;  %v2049_v5 = vld [vmem:[%s4717_s3 + $0x170] sm:$0xff]  ;;  %v4935_v51 = vld [vmem:[#allocation118_spill] sm:$0xff]  ;;  %v2430_v30 = vadd.f32 %v2382_v50, %v2046_v23  ;;  %v2657_v41 = vpop.permute.xlu0 %2656  ;;  %v2802_v11 = vmax.f32 %v2754_v12, 0.0  ;;  %v1802_v46 = vadd.f32 %v3111_v49, %v4315_v22  ;;  %v1793_v44 = vpop.f32.mrb[129].mxu0  ;;  %2847 = vst [vmem:[#allocation10 + $0xe0] sm:$0xff] %v2799_v4  ;;  %v4937_v36 = vld [vmem:[#allocation121_spill] sm:$0xff] }
 0x24f   :  { %v4936_v47 = vld [vmem:[#allocation64_spill] sm:$0xff]  ;;  %2849 = vst [vmem:[#allocation10 + $0xf0] sm:$0xff] %v2801_v53  ;;  %v4656_v32 = vadd.f32 %v2383_v17, %v2047_v21  ;;  %v4658_v40 = vadd.f32 %v2384_v18, %v2048_v15  ;;  %v2800_v10 = vmax.f32 %v2752_v38, 0.0  ;;  %v1794_v2 = vadd.f32 %v1793_v44, %v4937_v36  ;;  %v3112_v50 = vpop.f32.mrb[130].mxu0  ;;  %v1825_v12 = vpop.f32.mrb[145].mxu1  ;;  %s3308_s3 = smov [#allocation10]  }
 0x250   :  { %v2386_v42 = vmul.f32 %v4936_v47, %v4935_v51  ;;  %v4661_v54 = vadd.f32 %v2385_v60, %v2049_v5  ;;  %2850 = vst [vmem:[#allocation10 + $0xf8] sm:$0xff] %v2802_v11  ;;  %v2709_v23 = vmul.f32 %v4408_v59, %v1802_v46  ;;  %v1834_v53 = vadd.f32 %v3119_v45, %v4462_v19  ;;  %v1796_v17 = vpop.f32.mrb[131].mxu0  ;;  %v3120_v60 = vpop.f32.mrb[146].mxu1  ;;  %s2872_s24 = sshll.u32 %s3308_s3, 4  ;;  %s2873_s24 = int_to_ptr.vmem [resolvable:$true] %s2872_s24 }
 0x251   :  { %v1805_v22 = vadd.f32 %v3112_v50, %v4324_v0  ;;  %2848 = vst [vmem:[#allocation10 + $0xe8] sm:$0xff] %v2800_v10  ;;  %v2707_v18 = vmul.f32 %v4372_v1, %v1794_v2  ;;  %v1826_v15 = vadd.f32 %v1825_v12, %v4426_v52  ;;  %v1797_v51 = vadd.f32 %v1796_v17, %v4288_v8  ;;  %v1828_v0 = vpop.f32.mrb[147].mxu1  ;;  %v2661_v4 = vpop.permute.xlu1 %2660  ;;  %s3271_s25 = scalar_lea.vmem %s2873_s24, 6144  ;;  %p3276_p11 = scmp.lt.s32.totalorder %s2873_s24, %s2873_s24 }
 0x252   :  { %v4666_v21 = vadd.f32 %v2386_v42, %v2050_v7  ;;  %v2757_v5 = vadd.f32 %v2709_v23, %v4580_v14  ;;  %v2717_v47 = vmul.f32 %v2653_v6, %v1834_v53  ;;  %v1837_v19 = vadd.f32 %v3120_v60, %v4475_v63  ;;  %v2665_v6 = vpop.permute.xlu0 %2664  ;;  %p3272_p10 = scmp.ne.s32.totalorder %s2873_s24, %s3271_s25  ;;  %p3277_p12 = scmp.lt.s32.totalorder %s3271_s25, %s3271_s25 }
 0x253   :  { %v2710_v59 = vmul.f32 %v4417_v3, %v1805_v22  ;;  %v2755_v42 = vadd.f32 %v2707_v18, %v4561_v29  ;;  %v2715_v38 = vmul.f32 %v4578_v24, %v1826_v15  ;;  %v2708_v1 = vmul.f32 %v4379_v34, %v1797_v51  ;;  %v3115_v44 = vpop.f32.mrb[132].mxu0 }
 0x254   :  { %v1829_v52 = vadd.f32 %v1828_v0, %v4432_v28  ;;  %v2805_v49 = vmax.f32 %v2757_v5, 0.0  ;;  %v2765_v8 = vadd.f32 %v2717_v47, %v2429_v37  ;;  %v2718_v14 = vmul.f32 %v2657_v41, %v1837_v19  ;;  %v1809_v28 = vpop.f32.mrb[133].mxu0  ;;  %v4938_v47 = vld [vmem:[#allocation45_spill] sm:$0xff]  ;;  %p3278_p13 = por %p3277_p12, %p3276_p11 }
 0x255   :  { %v2758_v7 = vadd.f32 %v2710_v59, %v4582_v31  ;;  %v2803_v11 = vmax.f32 %v2755_v42, 0.0  ;;  %v2763_v3 = vadd.f32 %v2715_v38, %v2427_v35  ;;  %v2756_v63 = vadd.f32 %v2708_v1, %v4571_v55  ;;  %v3123_v35 = vpop.f32.mrb[148].mxu1  ;;  %v3116_v2 = vpop.f32.mrb[134].mxu0 }
 0x256   :  { %v2716_v46 = vmul.f32 %v4587_v27, %v1829_v52  ;;  %2853 = vst [vmem:[#allocation10 + $0x110] sm:$0xff] %v2805_v49  ;;  %v2813_v29 = vmax.f32 %v2765_v8, 0.0  ;;  %v2766_v10 = vadd.f32 %v2718_v14, %v2430_v30  ;;  %v1818_v34 = vadd.f32 %v3115_v44, %v4387_v16  ;;  %v1841_v16 = vpop.f32.mrb[149].mxu1  ;;  %v1812_v50 = vpop.f32.mrb[135].mxu0  ;;  %p3279_p0 = pnand %p3278_p13, %p3272_p10 }
 0x257   :  { %v2806_v24 = vmax.f32 %v2758_v7, 0.0  ;;  %2851 = vst [vmem:[#allocation10 + $0x100] sm:$0xff] %v2803_v11  ;;  %v2811_v37 = vmax.f32 %v2763_v3, 0.0  ;;  %v2804_v36 = vmax.f32 %v2756_v63, 0.0  ;;  %v1810_v41 = vadd.f32 %v1809_v28, %v4351_v56  ;;  %v2669_v23 = vpop.permute.xlu1 %2668  ;;  %v3124_v12 = vpop.f32.mrb[150].mxu1 }
 0x258   :  { %v2764_v31 = vadd.f32 %v2716_v46, %v4644_v13  ;;  %2861 = vst [vmem:[#allocation10 + $0x150] sm:$0xff] %v2813_v29  ;;  %v2814_v55 = vmax.f32 %v2766_v10, 0.0  ;;  %v2713_v27 = vmul.f32 %v4510_v43, %v1818_v34  ;;  %v1850_v45 = vadd.f32 %v3123_v35, %v4594_v39  ;;  %v1844_v18 = vpop.f32.mrb[151].mxu1  ;;  %v2673_v15 = vpop.permute.xlu0 %2672 }
 0x259   :  { %2854 = vst [vmem:[#allocation10 + $0x118] sm:$0xff] %v2806_v24  ;;  %v1821_v30 = vadd.f32 %v3116_v2, %v4396_v33  ;;  %2859 = vst [vmem:[#allocation10 + $0x140] sm:$0xff] %v2811_v37  ;;  %v2711_v13 = vmul.f32 %v4454_v9, %v1810_v41  ;;  %v1842_v56 = vadd.f32 %v1841_v16, %v4522_v20 }
 0x25a   :  { %2852 = vst [vmem:[#allocation10 + $0x108] sm:$0xff] %v2804_v36  ;;  %v2812_v53 = vmax.f32 %v2764_v31, 0.0  ;;  %v1813_v22 = vadd.f32 %v1812_v50, %v4360_v57  ;;  %2862 = vst [vmem:[#allocation10 + $0x158] sm:$0xff] %v2814_v55  ;;  %v2761_v43 = vadd.f32 %v2713_v27, %v4597_v58  ;;  %v2721_v17 = vmul.f32 %v2669_v23, %v1850_v45 }
 0x25b   :  { %v2714_v39 = vmul.f32 %v4515_v25, %v1821_v30  ;;  %v1853_v33 = vadd.f32 %v3124_v12, %v4611_v48  ;;  %v2759_v51 = vadd.f32 %v2711_v13, %v4590_v62  ;;  %v2719_v60 = vmul.f32 %v2661_v4, %v1842_v56  ;;  %v4939_v48 = vld [vmem:[#allocation68_spill] sm:$0xff] }
 0x25c   :  { %2860 = vst [vmem:[#allocation10 + $0x148] sm:$0xff] %v2812_v53  ;;  %v2712_v9 = vmul.f32 %v4459_v61, %v1813_v22  ;;  %v1845_v20 = vadd.f32 %v1844_v18, %v4539_v26  ;;  %v2809_v57 = vmax.f32 %v2761_v43, 0.0  ;;  %v2769_v5 = vadd.f32 %v2721_v17, %v4661_v54 }
 0x25d   :  { %v2762_v58 = vadd.f32 %v2714_v39, %v4938_v47  ;;  %v2722_v59 = vmul.f32 %v2673_v15, %v1853_v33  ;;  %v2807_v19 = vmax.f32 %v2759_v51, 0.0  ;;  %v2767_v25 = vadd.f32 %v2719_v60, %v4656_v32 }
 0x25e   :  { %v2760_v0 = vadd.f32 %v2712_v9, %v4939_v48  ;;  %v2720_v42 = vmul.f32 %v2665_v6, %v1845_v20  ;;  %2857 = vst [vmem:[#allocation10 + $0x130] sm:$0xff] %v2809_v57  ;;  %v2817_v62 = vmax.f32 %v2769_v5, 0.0 }
 0x25f   :  { %v2810_v4 = vmax.f32 %v2762_v58, 0.0  ;;  %v2770_v61 = vadd.f32 %v2722_v59, %v4666_v21  ;;  %2855 = vst [vmem:[#allocation10 + $0x120] sm:$0xff] %v2807_v19  ;;  %v2815_v26 = vmax.f32 %v2767_v25, 0.0 }
 0x260   :  { %v2808_v38 = vmax.f32 %v2760_v0, 0.0  ;;  %v2768_v54 = vadd.f32 %v2720_v42, %v4658_v40  ;;  %2865 = vst [vmem:[#allocation10 + $0x170] sm:$0xff] %v2817_v62 }
 0x261   :  { %2858 = vst [vmem:[#allocation10 + $0x138] sm:$0xff] %v2810_v4  ;;  %v2818_v1 = vmax.f32 %v2770_v61, 0.0  ;;  %2863 = vst [vmem:[#allocation10 + $0x160] sm:$0xff] %v2815_v26 }
 0x262   :  { %2856 = vst [vmem:[#allocation10 + $0x128] sm:$0xff] %v2808_v38  ;;  %v2816_v32 = vmax.f32 %v2768_v54, 0.0 }
 0x263   :  { %2866 = vst [vmem:[#allocation10 + $0x178] sm:$0xff] %v2818_v1 }
 0x264   :  { %2864 = vst [vmem:[#allocation10 + $0x168] sm:$0xff] %v2816_v32 }
 0x265   :  { %3282 = shalt.err (!%p3279_p0)
}
 0x266   :  { %s3283_s30 = scalar_lea.hbm %s4719_s5, 6144 }
 0x267   :  { %p3284_p1 = scmp.ne.s32.totalorder %s4719_s5, %s3283_s30  ;;  %p3287_p2 = scmp.lt.u32.totalorder %s3283_s30, %s4719_s5 }
 0x269   :  { %p3289_p3 = pnand %p3287_p2, %p3284_p1 }
 0x26b   :  { %3292 = shalt.err (!%p3289_p3)
}
 0x26c   :  { %s3309_s28 = smov 128   ;;  %s3310_s29 = smov 8  }
 0x26d   :  { %2878 = dma.vmem_to_hbm [thread:$0]  %s2873_s24, 6144, %s4719_s5, [#allocation6], %s3309_s28, %s3309_s28, %s3310_s29  }
 0x26e   :  { %3297 = dma.done.wait [#allocation6], 6144  }
 0x26f   :  { %3298 = vsyncadd [#allocation6], 4294961152 }
 0x270   :  { %2882 = vsyncpa [#allocation5], 1 }
 0x271   :  { %2883 = vsyncpa [#allocation8], 1 }
 0x272   :  { %2884 = vsyncpa [#allocation6], 1 }

</bundles_post_ra>
